<compile_context>
chip_gen: v7x
topology: tpu7x:2x2x1
jax: 0.10.0
libtpu: 0.0.40
codegen_flags: <defaults>
</compile_context>

<pallas_src>
import numpy as np
import jax
import jax.numpy as jnp
from jax.experimental import pallas as pl
from jax.experimental.pallas import tpu as pltpu

START_TAG = "<START>"
STOP_TAG = "<STOP>"
tag_to_ix = {"B": 0, "I": 1, "O": 2, START_TAG: 3, STOP_TAG: 4}
START_IDX = tag_to_ix[START_TAG]
STOP_IDX = tag_to_ix[STOP_TAG]

_LANES = 128


def _round8(x):
    return (x + 7) // 8 * 8


def _layout(E, H, T):
    """Row offsets of each parameter inside the single packed (rows, 128) buffer."""
    R_WIH = 0                               # (E, 8H)  fused input->gate weights (fwd+bwd cols)
    R_WHH = _round8(R_WIH + E)              # (2H, 8H) block-diagonal recurrent weights
    R_BIAS = _round8(R_WHH + 2 * H)         # (1, 8H)  b_ih + b_hh, fused layout
    R_HC = R_BIAS + 1                       # (1, 4H)  [h0_f|h0_b | c0_f|c0_b]
    R_W2T = _round8(R_HC + 1)               # (2H, T)  hidden2tag weight^T
    R_B2T = _round8(R_W2T + 2 * H)          # (1, T)
    R_TR = _round8(R_B2T + 1)               # (T, T)   transitions^T  [prev, next]
    R_TOT = _round8(R_TR + T)
    return (R_WIH, R_WHH, R_BIAS, R_HC, R_W2T, R_B2T, R_TR, R_TOT)


# ----------------------------------------------------------------------------
# Fused kernel: BiLSTM + hidden2tag + Viterbi + backtrace.
#   inputs : embeds (S, E) f32, packed weights (R_TOT, 128) f32
#   outputs: feats (S, T) f32, path (1, S) int32, score (1, 1) f32
#   scratch: hs (S, 2H) f32, bp (S, T) int32
# ----------------------------------------------------------------------------
def _make_kernel(S, E, H, T):
    H2 = 2 * H
    G = 8 * H
    R_WIH, R_WHH, R_BIAS, R_HC, R_W2T, R_B2T, R_TR, _ = _layout(E, H, T)

    def kernel(embeds_ref, w_ref, feats_ref, path_ref, score_ref, hs_ref, bp_ref):
        # ---- unpack the single packed weight buffer (static, aligned slices) ----
        wih = w_ref[R_WIH:R_WIH + E, 0:G]                        # (E, 8H) f32
        whh_bf = w_ref[R_WHH:R_WHH + H2, 0:G].astype(jnp.bfloat16)  # hoisted, loop-invariant
        bias = w_ref[R_BIAS:R_BIAS + 1, 0:G]                     # (1, 8H)
        h = w_ref[R_HC:R_HC + 1, 0:H2]                           # (1, 2H) [h_f|h_b]
        cstate = w_ref[R_HC:R_HC + 1, H2:2 * H2]                 # (1, 2H) [c_f|c_b]
        w2t = w_ref[R_W2T:R_W2T + H2, 0:T]                       # (2H, T)
        b2t = w_ref[R_B2T:R_B2T + 1, 0:T]                        # (1, T)
        transT = w_ref[R_TR:R_TR + T, 0:T]                       # (T, T) [prev, next]

        # ---- input projection, hoisted out of the recurrence (natural time) ----
        x = embeds_ref[...]                                      # (S, E)
        xproj = jnp.dot(x, wih, preferred_element_type=jnp.float32) + bias  # (S, 8H)

        # lane mask for forward-direction gate columns (blocks alternate fwd/bwd)
        lane_g = jax.lax.broadcasted_iota(jnp.int32, (1, G), 1)
        fwd_mask = lane_g < 0                                    # all-False
        for blk in range(4):
            lo, hi = 2 * blk * H, (2 * blk + 1) * H
            fwd_mask = fwd_mask | ((lane_g >= lo) & (lane_g < hi))

        # ---- fused fwd+bwd LSTM recurrence: one bf16 matmul per step ------------
        for s in range(S):                                       # static -> fully unrolled
            # fwd gates from time s, bwd gates from time S-1-s (off the h-chain)
            xrow = jnp.where(fwd_mask, xproj[s:s + 1, :], xproj[S - 1 - s:S - s, :])
            gates = xrow + jnp.dot(h.astype(jnp.bfloat16), whh_bf,
                                   preferred_element_type=jnp.float32)   # (1, 8H)
            sig = jax.nn.sigmoid(gates[:, :6 * H])               # [i_f i_b f_f f_b o_f o_b]
            g_cat = jnp.tanh(gates[:, 6 * H:])                   # [g_f g_b]
            i_cat = sig[:, :H2]
            f_cat = sig[:, H2:2 * H2]
            o_cat = sig[:, 2 * H2:3 * H2]
            cstate = f_cat * cstate + i_cat * g_cat
            h = o_cat * jnp.tanh(cstate)
            hs_ref[s:s + 1, 0:H] = h[:, 0:H]                     # fwd state -> time s
            hs_ref[S - 1 - s:S - s, H:H2] = h[:, H:H2]           # bwd state -> time S-1-s

        # hidden2tag (hs scratch is already in natural time order, [fwd|bwd])
        hcat = hs_ref[...]                                       # (S, 2H)
        feats = jnp.dot(hcat, w2t, preferred_element_type=jnp.float32) + b2t  # (S, T)
        feats_ref[...] = feats

        # ---- Viterbi forward recursion, vectorized over the (T,T) lattice -------
        prev_iota = jax.lax.broadcasted_iota(jnp.int32, (T, T), 0)
        next_iota = jax.lax.broadcasted_iota(jnp.int32, (T, T), 1)
        ident = (prev_iota == next_iota).astype(jnp.float32)
        col = jax.lax.broadcasted_iota(jnp.int32, (T, 1), 0)

        fv = jnp.where(col == START_IDX, 0.0, -10000.0).astype(jnp.float32)  # (T,1) over prev
        for t in range(S):                                       # static -> fully unrolled
            scores = transT + fv                                 # (T, T): [prev, next]
            m_row = jnp.max(scores, axis=0, keepdims=True)       # (1, T) best per next tag
            bp_ref[t:t + 1, :] = jnp.min(                        # first argmax (lowest prev)
                jnp.where(scores == m_row, prev_iota, T), axis=0, keepdims=True)
            new_row = m_row + feats[t:t + 1, :]                  # emission added after max
            fv = jnp.sum(ident * new_row, axis=1, keepdims=True)  # (1,T) -> (T,1)

        terminal = fv + transT[:, STOP_IDX:STOP_IDX + 1]         # (T, 1)
        m = jnp.max(terminal, axis=0, keepdims=True)             # (1, 1)
        best = jnp.min(jnp.where(terminal == m, col, T), axis=0, keepdims=True)
        score_ref[...] = m

        # ---- in-kernel backtrace -> decoded path as a (1, S) int32 row ----------
        lane_t = jax.lax.broadcasted_iota(jnp.int32, (1, T), 1)
        lane_s = jax.lax.broadcasted_iota(jnp.int32, (1, S), 1)
        path = jnp.where(lane_s == S - 1, best, 0)
        for t in range(S - 1, 0, -1):                            # static -> fully unrolled
            best = jnp.sum(jnp.where(lane_t == best, bp_ref[t:t + 1, :], 0),
                           axis=1, keepdims=True)
            path = jnp.where(lane_s == t - 1, best, path)
        path_ref[...] = path

    return kernel


# ----------------------------------------------------------------------------
# Host-side (one-time) packing of ALL constant params into one (R, 128) buffer.
# ----------------------------------------------------------------------------
def pack_params(p):
    H = int(p["h0"].shape[-1])
    E = int(p["emb"].shape[-1])
    T = int(p["transitions"].shape[0])
    G = 8 * H
    assert G <= _LANES and 4 * H <= _LANES and T <= _LANES
    R_WIH, R_WHH, R_BIAS, R_HC, R_W2T, R_B2T, R_TR, R_TOT = _layout(E, H, T)
    W = np.zeros((R_TOT, _LANES), np.float32)

    def split4(w):                                    # PyTorch gate rows: [i, f, g, o]
        w = np.asarray(w, np.float32)
        return [w[k * H:(k + 1) * H] for k in range(4)]

    ih_f, ih_b = split4(p["w_ih_f"]), split4(p["w_ih_b"])
    hh_f, hh_b = split4(p["w_hh_f"]), split4(p["w_hh_b"])
    b_f = np.asarray(p["b_ih_f"], np.float32) + np.asarray(p["b_hh_f"], np.float32)
    b_b = np.asarray(p["b_ih_b"], np.float32) + np.asarray(p["b_hh_b"], np.float32)
    bf4 = [b_f[k * H:(k + 1) * H] for k in range(4)]
    bb4 = [b_b[k * H:(k + 1) * H] for k in range(4)]

    # fused column block order (each block = H fwd cols + H bwd cols): i, f, o, g
    order = [0, 1, 3, 2]
    for blk, g in enumerate(order):
        cf = slice(2 * blk * H, (2 * blk + 1) * H)
        cb = slice((2 * blk + 1) * H, (2 * blk + 2) * H)
        W[R_WIH:R_WIH + E, cf] = ih_f[g].T
        W[R_WIH:R_WIH + E, cb] = ih_b[g].T
        W[R_WHH:R_WHH + H, cf] = hh_f[g].T
        W[R_WHH + H:R_WHH + 2 * H, cb] = hh_b[g].T
        W[R_BIAS, cf] = bf4[g]
        W[R_BIAS, cb] = bb4[g]

    h0 = np.asarray(p["h0"], np.float32)
    c0 = np.asarray(p["c0"], np.float32)
    W[R_HC, 0:H] = h0[0, 0]
    W[R_HC, H:2 * H] = h0[1, 0]
    W[R_HC, 2 * H:3 * H] = c0[0, 0]
    W[R_HC, 3 * H:4 * H] = c0[1, 0]
    W[R_W2T:R_W2T + 2 * H, 0:T] = np.asarray(p["w2t"], np.float32).T
    W[R_B2T, 0:T] = np.asarray(p["b2t"], np.float32)
    W[R_TR:R_TR + T, 0:T] = np.asarray(p["transitions"], np.float32).T  # [prev, next]
    return jnp.asarray(W)


def make_bilstm_crf_forward(S, E, H, T):
    kernel = _make_kernel(S, E, H, T)
    vmem = pl.BlockSpec(memory_space=pltpu.MemorySpace.VMEM)
    call = pl.pallas_call(
        kernel,
        out_shape=(jax.ShapeDtypeStruct((S, T), jnp.float32),
                   jax.ShapeDtypeStruct((1, S), jnp.int32),
                   jax.ShapeDtypeStruct((1, 1), jnp.float32)),
        in_specs=[vmem, vmem],
        out_specs=(vmem, vmem, vmem),
        scratch_shapes=[pltpu.VMEM((S, 2 * H), jnp.float32),
                        pltpu.VMEM((S, T), jnp.int32)],
    )

    @jax.jit
    def forward(sentence, emb, w_packed):
        embeds = emb[sentence].astype(jnp.float32)    # glue: embedding lookup
        return call(embeds, w_packed)

    return forward


# ----------------------------------------------------------------------------
# Pure-numpy reference (for correctness check)
# ----------------------------------------------------------------------------
def _sig(x):
    return 1.0 / (1.0 + np.exp(-x))


def ref_forward(sentence, p):
    emb = np.asarray(p["emb"], np.float32)
    x = emb[np.asarray(sentence)]
    S = x.shape[0]
    H = p["h0"].shape[-1]

    def run_dir(wih, whh, bih, bhh, h, c, order):
        wih, whh = np.asarray(wih, np.float64), np.asarray(whh, np.float64)
        bih, bhh = np.asarray(bih, np.float64), np.asarray(bhh, np.float64)
        h, c = np.asarray(h, np.float64), np.asarray(c, np.float64)
        outs = np.zeros((S, H), np.float64)
        for t in order:
            g = wih @ x[t] + whh @ h + bih + bhh
            i = _sig(g[:H]); f = _sig(g[H:2 * H])
            gg = np.tanh(g[2 * H:3 * H]); o = _sig(g[3 * H:])
            c = f * c + i * gg
            h = o * np.tanh(c)
            outs[t] = h
        return outs

    hf = run_dir(p["w_ih_f"], p["w_hh_f"], p["b_ih_f"], p["b_hh_f"],
                 p["h0"][0, 0], p["c0"][0, 0], range(S))
    hb = run_dir(p["w_ih_b"], p["w_hh_b"], p["b_ih_b"], p["b_hh_b"],
                 p["h0"][1, 0], p["c0"][1, 0], range(S - 1, -1, -1))
    hcat = np.concatenate([hf, hb], axis=1)
    feats = hcat @ np.asarray(p["w2t"]).T + np.asarray(p["b2t"])

    trans = np.asarray(p["transitions"], np.float64)
    T = trans.shape[0]
    fv = np.full((T,), -10000.0); fv[START_IDX] = 0.0
    bptrs = []
    for feat in feats:
        nt = trans + fv[None, :]
        best = nt.argmax(axis=1)
        bptrs.append(best)
        fv = nt.max(axis=1) + feat
    term = fv + trans[STOP_IDX]
    b = int(term.argmax()); score = float(term[b])
    path = [b]
    for bpt in reversed(bptrs):
        b = int(bpt[b]); path.append(b)
    start = path.pop()
    assert start == START_IDX
    path.reverse()
    return feats.astype(np.float32), score, path


def score_path_ref(feats, trans, path):
    """Exact CRF score of a given tag path (reference parameters)."""
    tags = [START_IDX] + list(path)
    s = 0.0
    for i in range(feats.shape[0]):
        s += float(trans[tags[i + 1], tags[i]]) + float(feats[i, tags[i + 1]])
    s += float(trans[STOP_IDX, tags[-1]])
    return s


# ----------------------------------------------------------------------------
if __name__ == "__main__":
    V, E, HID, S = 20, 16, 32, 8           # vocab, embedding_dim, hidden_dim, seq len
    H = HID // 2
    T = len(tag_to_ix)                      # 5
    k = 1.0 / np.sqrt(H)

    key = jax.random.PRNGKey(0)
    ks = jax.random.split(key, 17)

    params = {
        "emb":    jax.random.normal(ks[0], (V, E), jnp.float32),
        "w_ih_f": jax.random.uniform(ks[1], (4 * H, E), jnp.float32, -k, k),
        "w_hh_f": jax.random.uniform(ks[2], (4 * H, H), jnp.float32, -k, k),
        "b_ih_f": jax.random.uniform(ks[3], (4 * H,), jnp.float32, -k, k),
        "b_hh_f": jax.random.uniform(ks[4], (4 * H,), jnp.float32, -k, k),
        "w_ih_b": jax.random.uniform(ks[5], (4 * H, E), jnp.float32, -k, k),
        "w_hh_b": jax.random.uniform(ks[6], (4 * H, H), jnp.float32, -k, k),
        "b_ih_b": jax.random.uniform(ks[7], (4 * H,), jnp.float32, -k, k),
        "b_hh_b": jax.random.uniform(ks[8], (4 * H,), jnp.float32, -k, k),
        "w2t":    jax.random.normal(ks[9], (T, HID), jnp.float32) * (1.0 / np.sqrt(HID)),
        "b2t":    jax.random.normal(ks[10], (T,), jnp.float32) * 0.01,
        "h0":     jax.random.normal(ks[11], (2, 1, H), jnp.float32),
        "c0":     jax.random.normal(ks[12], (2, 1, H), jnp.float32),
    }
    trans = jax.random.normal(ks[13], (T, T), jnp.float32)
    trans = trans.at[START_IDX, :].set(-10000.0)
    trans = trans.at[:, STOP_IDX].set(-10000.0)
    params["transitions"] = trans

    sentence = jax.random.randint(ks[14], (S,), 0, V)

    # one-time packing + one-time trace/compile; per-call path is the jitted fn only
    w_packed = pack_params(params)
    forward = make_bilstm_crf_forward(S, E, H, T)

    feats, path, score = forward(sentence, params["emb"], w_packed)
    jax.block_until_ready((feats, path, score))

    tag_seq = [int(v) for v in np.asarray(path)[0]]
    path_score = float(np.asarray(score)[0, 0])

    # check against pure numpy reference (kernel uses bf16 operands only in the
    # per-step recurrent dot -> slightly looser tolerances than pure f32)
    feats_ref, score_ref, path_ref = ref_forward(sentence, params)
    assert np.allclose(np.asarray(feats), feats_ref, atol=1e-2, rtol=1e-2), "feats mismatch"
    assert abs(path_score - score_ref) < 5e-2, "viterbi score mismatch"
    if tag_seq != path_ref:
        # near-tied paths may flip under bf16 perturbation; accept any path whose
        # exact reference score matches the optimum within tolerance
        trans64 = np.asarray(params["transitions"], np.float64)
        assert score_path_ref(feats_ref, trans64, tag_seq) >= score_ref - 5e-2, \
            "viterbi path mismatch"

    print("KERNEL_OK")
</pallas_src>

<mosaic_0001>
module attributes {stable_mosaic.version = 11 : i64} {
  func.func @kernel(%arg0: memref<8x16xf32, #tpu.memory_space<vmem>>, %arg1: memref<104x128xf32, #tpu.memory_space<vmem>>, %arg2: memref<8x5xf32, #tpu.memory_space<vmem>>, %arg3: memref<1x8xi32, #tpu.memory_space<vmem>>, %arg4: memref<1x1xf32, #tpu.memory_space<vmem>>, %arg5: memref<8x32xf32, #tpu.memory_space<vmem>>, %arg6: memref<8x5xi32, #tpu.memory_space<vmem>>) attributes {dimension_semantics = [], scalar_prefetch = 0 : i64, scratch_operands = 2 : i64, tpu.core_type = #tpu.core_type<tc>} {
    %c0 = arith.constant 0 : index
    %c0_0 = arith.constant 0 : index
    %0 = vector.load %arg1[%c0, %c0_0] : memref<104x128xf32, #tpu.memory_space<vmem>>, vector<16x128xf32>
    %c16 = arith.constant 16 : index
    %c0_1 = arith.constant 0 : index
    %1 = vector.load %arg1[%c16, %c0_1] : memref<104x128xf32, #tpu.memory_space<vmem>>, vector<32x128xf32>
    %2 = arith.truncf %1 : vector<32x128xf32> to vector<32x128xbf16>
    %c48 = arith.constant 48 : index
    %c0_2 = arith.constant 0 : index
    %3 = vector.load %arg1[%c48, %c0_2] : memref<104x128xf32, #tpu.memory_space<vmem>>, vector<1x128xf32>
    %c49 = arith.constant 49 : index
    %c0_3 = arith.constant 0 : index
    %4 = vector.load %arg1[%c49, %c0_3] : memref<104x128xf32, #tpu.memory_space<vmem>>, vector<1x32xf32>
    %c49_4 = arith.constant 49 : index
    %c32 = arith.constant 32 : index
    %5 = vector.load %arg1[%c49_4, %c32] : memref<104x128xf32, #tpu.memory_space<vmem>>, vector<1x32xf32>
    %c56 = arith.constant 56 : index
    %c0_5 = arith.constant 0 : index
    %6 = vector.load %arg1[%c56, %c0_5] : memref<104x128xf32, #tpu.memory_space<vmem>>, vector<32x5xf32>
    %c88 = arith.constant 88 : index
    %c0_6 = arith.constant 0 : index
    %7 = vector.load %arg1[%c88, %c0_6] : memref<104x128xf32, #tpu.memory_space<vmem>>, vector<1x5xf32>
    %c96 = arith.constant 96 : index
    %c0_7 = arith.constant 0 : index
    %8 = vector.load %arg1[%c96, %c0_7] : memref<104x128xf32, #tpu.memory_space<vmem>>, vector<5x5xf32>
    %c0_8 = arith.constant 0 : index
    %c0_9 = arith.constant 0 : index
    %9 = vector.load %arg0[%c0_8, %c0_9] : memref<8x16xf32, #tpu.memory_space<vmem>>, vector<8x16xf32>
    %cst = arith.constant dense<0.000000e+00> : vector<8x128xf32>
    %10 = tpu.matmul %9, %0, %cst {dimension_numbers = #tpu.dot_dimension_numbers<[1], [0], [0], [1], [0, 0, 1, 1], [], []>} : vector<8x16xf32>, vector<16x128xf32>, vector<8x128xf32> -> vector<8x128xf32>
    %11 = vector.broadcast %3 : vector<1x128xf32> to vector<8x128xf32>
    %12 = arith.addf %10, %11 : vector<8x128xf32>
    %13 = tpu.iota {dimensions = array<i32: 1>} : vector<1x128xi32>
    %c0_i32 = arith.constant 0 : i32
    %14 = vector.broadcast %c0_i32 : i32 to vector<1x128xi32>
    %15 = arith.cmpi slt, %13, %14 : vector<1x128xi32>
    %c0_i32_10 = arith.constant 0 : i32
    %16 = vector.broadcast %c0_i32_10 : i32 to vector<1x128xi32>
    %17 = arith.cmpi sge, %13, %16 : vector<1x128xi32>
    %c16_i32 = arith.constant 16 : i32
    %18 = vector.broadcast %c16_i32 : i32 to vector<1x128xi32>
    %19 = arith.cmpi slt, %13, %18 : vector<1x128xi32>
    %20 = arith.andi %17, %19 : vector<1x128xi1>
    %21 = arith.ori %15, %20 : vector<1x128xi1>
    %c32_i32 = arith.constant 32 : i32
    %22 = vector.broadcast %c32_i32 : i32 to vector<1x128xi32>
    %23 = arith.cmpi sge, %13, %22 : vector<1x128xi32>
    %c48_i32 = arith.constant 48 : i32
    %24 = vector.broadcast %c48_i32 : i32 to vector<1x128xi32>
    %25 = arith.cmpi slt, %13, %24 : vector<1x128xi32>
    %26 = arith.andi %23, %25 : vector<1x128xi1>
    %27 = arith.ori %21, %26 : vector<1x128xi1>
    %c64_i32 = arith.constant 64 : i32
    %28 = vector.broadcast %c64_i32 : i32 to vector<1x128xi32>
    %29 = arith.cmpi sge, %13, %28 : vector<1x128xi32>
    %c80_i32 = arith.constant 80 : i32
    %30 = vector.broadcast %c80_i32 : i32 to vector<1x128xi32>
    %31 = arith.cmpi slt, %13, %30 : vector<1x128xi32>
    %32 = arith.andi %29, %31 : vector<1x128xi1>
    %33 = arith.ori %27, %32 : vector<1x128xi1>
    %c96_i32 = arith.constant 96 : i32
    %34 = vector.broadcast %c96_i32 : i32 to vector<1x128xi32>
    %35 = arith.cmpi sge, %13, %34 : vector<1x128xi32>
    %c112_i32 = arith.constant 112 : i32
    %36 = vector.broadcast %c112_i32 : i32 to vector<1x128xi32>
    %37 = arith.cmpi slt, %13, %36 : vector<1x128xi32>
    %38 = arith.andi %35, %37 : vector<1x128xi1>
    %39 = arith.ori %33, %38 : vector<1x128xi1>
    %40 = vector.extract_strided_slice %12 {offsets = [0, 0], sizes = [1, 128], strides = [1, 1]} : vector<8x128xf32> to vector<1x128xf32>
    %41 = vector.extract_strided_slice %12 {offsets = [7, 0], sizes = [1, 128], strides = [1, 1]} : vector<8x128xf32> to vector<1x128xf32>
    %42 = arith.select %39, %40, %41 : vector<1x128xi1>, vector<1x128xf32>
    %43 = arith.truncf %4 : vector<1x32xf32> to vector<1x32xbf16>
    %cst_11 = arith.constant dense<0.000000e+00> : vector<1x128xf32>
    %44 = tpu.matmul %43, %2, %cst_11 {dimension_numbers = #tpu.dot_dimension_numbers<[1], [0], [0], [1], [0, 0, 1, 1], [], []>} : vector<1x32xbf16>, vector<32x128xbf16>, vector<1x128xf32> -> vector<1x128xf32>
    %45 = arith.addf %42, %44 : vector<1x128xf32>
    %46 = vector.extract_strided_slice %45 {offsets = [0, 0], sizes = [1, 96], strides = [1, 1]} : vector<1x128xf32> to vector<1x96xf32>
    %47 = arith.negf %46 : vector<1x96xf32>
    %48 = math.exp %47 : vector<1x96xf32>
    %cst_12 = arith.constant 1.000000e+00 : f32
    %49 = vector.broadcast %cst_12 : f32 to vector<1x96xf32>
    %50 = arith.addf %49, %48 : vector<1x96xf32>
    %51 = arith.divf %49, %50 : vector<1x96xf32>
    %52 = vector.extract_strided_slice %45 {offsets = [0, 96], sizes = [1, 32], strides = [1, 1]} : vector<1x128xf32> to vector<1x32xf32>
    %53 = math.tanh %52 : vector<1x32xf32>
    %54 = vector.extract_strided_slice %51 {offsets = [0, 0], sizes = [1, 32], strides = [1, 1]} : vector<1x96xf32> to vector<1x32xf32>
    %55 = vector.extract_strided_slice %51 {offsets = [0, 32], sizes = [1, 32], strides = [1, 1]} : vector<1x96xf32> to vector<1x32xf32>
    %56 = vector.extract_strided_slice %51 {offsets = [0, 64], sizes = [1, 32], strides = [1, 1]} : vector<1x96xf32> to vector<1x32xf32>
    %57 = arith.mulf %55, %5 : vector<1x32xf32>
    %58 = arith.mulf %54, %53 : vector<1x32xf32>
    %59 = arith.addf %57, %58 : vector<1x32xf32>
    %60 = math.tanh %59 : vector<1x32xf32>
    %61 = arith.mulf %56, %60 : vector<1x32xf32>
    %62 = vector.extract_strided_slice %61 {offsets = [0, 0], sizes = [1, 16], strides = [1, 1]} : vector<1x32xf32> to vector<1x16xf32>
    %c0_13 = arith.constant 0 : index
    %c0_14 = arith.constant 0 : index
    %63 = vector.load %arg5[%c0_13, %c0_14] : memref<8x32xf32, #tpu.memory_space<vmem>>, vector<1x16xf32>
    tpu.vector_store %arg5[%c0_13, %c0_14], %62 {strides = array<i32>} : memref<8x32xf32, #tpu.memory_space<vmem>>, vector<1x16xf32>,
    %64 = vector.extract_strided_slice %61 {offsets = [0, 16], sizes = [1, 16], strides = [1, 1]} : vector<1x32xf32> to vector<1x16xf32>
    %c7 = arith.constant 7 : index
    %c16_15 = arith.constant 16 : index
    %65 = vector.load %arg5[%c7, %c16_15] : memref<8x32xf32, #tpu.memory_space<vmem>>, vector<1x16xf32>
    tpu.vector_store %arg5[%c7, %c16_15], %64 {strides = array<i32>} : memref<8x32xf32, #tpu.memory_space<vmem>>, vector<1x16xf32>,
    %66 = vector.extract_strided_slice %12 {offsets = [1, 0], sizes = [1, 128], strides = [1, 1]} : vector<8x128xf32> to vector<1x128xf32>
    %67 = vector.extract_strided_slice %12 {offsets = [6, 0], sizes = [1, 128], strides = [1, 1]} : vector<8x128xf32> to vector<1x128xf32>
    %68 = arith.select %39, %66, %67 : vector<1x128xi1>, vector<1x128xf32>
    %69 = arith.truncf %61 : vector<1x32xf32> to vector<1x32xbf16>
    %cst_16 = arith.constant dense<0.000000e+00> : vector<1x128xf32>
    %70 = tpu.matmul %69, %2, %cst_16 {dimension_numbers = #tpu.dot_dimension_numbers<[1], [0], [0], [1], [0, 0, 1, 1], [], []>} : vector<1x32xbf16>, vector<32x128xbf16>, vector<1x128xf32> -> vector<1x128xf32>
    %71 = arith.addf %68, %70 : vector<1x128xf32>
    %72 = vector.extract_strided_slice %71 {offsets = [0, 0], sizes = [1, 96], strides = [1, 1]} : vector<1x128xf32> to vector<1x96xf32>
    %73 = arith.negf %72 : vector<1x96xf32>
    %74 = math.exp %73 : vector<1x96xf32>
    %cst_17 = arith.constant 1.000000e+00 : f32
    %75 = vector.broadcast %cst_17 : f32 to vector<1x96xf32>
    %76 = arith.addf %75, %74 : vector<1x96xf32>
    %77 = arith.divf %75, %76 : vector<1x96xf32>
    %78 = vector.extract_strided_slice %71 {offsets = [0, 96], sizes = [1, 32], strides = [1, 1]} : vector<1x128xf32> to vector<1x32xf32>
    %79 = math.tanh %78 : vector<1x32xf32>
    %80 = vector.extract_strided_slice %77 {offsets = [0, 0], sizes = [1, 32], strides = [1, 1]} : vector<1x96xf32> to vector<1x32xf32>
    %81 = vector.extract_strided_slice %77 {offsets = [0, 32], sizes = [1, 32], strides = [1, 1]} : vector<1x96xf32> to vector<1x32xf32>
    %82 = vector.extract_strided_slice %77 {offsets = [0, 64], sizes = [1, 32], strides = [1, 1]} : vector<1x96xf32> to vector<1x32xf32>
    %83 = arith.mulf %81, %59 : vector<1x32xf32>
    %84 = arith.mulf %80, %79 : vector<1x32xf32>
    %85 = arith.addf %83, %84 : vector<1x32xf32>
    %86 = math.tanh %85 : vector<1x32xf32>
    %87 = arith.mulf %82, %86 : vector<1x32xf32>
    %88 = vector.extract_strided_slice %87 {offsets = [0, 0], sizes = [1, 16], strides = [1, 1]} : vector<1x32xf32> to vector<1x16xf32>
    %c1 = arith.constant 1 : index
    %c0_18 = arith.constant 0 : index
    %89 = vector.load %arg5[%c1, %c0_18] : memref<8x32xf32, #tpu.memory_space<vmem>>, vector<1x16xf32>
    tpu.vector_store %arg5[%c1, %c0_18], %88 {strides = array<i32>} : memref<8x32xf32, #tpu.memory_space<vmem>>, vector<1x16xf32>,
    %90 = vector.extract_strided_slice %87 {offsets = [0, 16], sizes = [1, 16], strides = [1, 1]} : vector<1x32xf32> to vector<1x16xf32>
    %c6 = arith.constant 6 : index
    %c16_19 = arith.constant 16 : index
    %91 = vector.load %arg5[%c6, %c16_19] : memref<8x32xf32, #tpu.memory_space<vmem>>, vector<1x16xf32>
    tpu.vector_store %arg5[%c6, %c16_19], %90 {strides = array<i32>} : memref<8x32xf32, #tpu.memory_space<vmem>>, vector<1x16xf32>,
    %92 = vector.extract_strided_slice %12 {offsets = [2, 0], sizes = [1, 128], strides = [1, 1]} : vector<8x128xf32> to vector<1x128xf32>
    %93 = vector.extract_strided_slice %12 {offsets = [5, 0], sizes = [1, 128], strides = [1, 1]} : vector<8x128xf32> to vector<1x128xf32>
    %94 = arith.select %39, %92, %93 : vector<1x128xi1>, vector<1x128xf32>
    %95 = arith.truncf %87 : vector<1x32xf32> to vector<1x32xbf16>
    %cst_20 = arith.constant dense<0.000000e+00> : vector<1x128xf32>
    %96 = tpu.matmul %95, %2, %cst_20 {dimension_numbers = #tpu.dot_dimension_numbers<[1], [0], [0], [1], [0, 0, 1, 1], [], []>} : vector<1x32xbf16>, vector<32x128xbf16>, vector<1x128xf32> -> vector<1x128xf32>
    %97 = arith.addf %94, %96 : vector<1x128xf32>
    %98 = vector.extract_strided_slice %97 {offsets = [0, 0], sizes = [1, 96], strides = [1, 1]} : vector<1x128xf32> to vector<1x96xf32>
    %99 = arith.negf %98 : vector<1x96xf32>
    %100 = math.exp %99 : vector<1x96xf32>
    %cst_21 = arith.constant 1.000000e+00 : f32
    %101 = vector.broadcast %cst_21 : f32 to vector<1x96xf32>
    %102 = arith.addf %101, %100 : vector<1x96xf32>
    %103 = arith.divf %101, %102 : vector<1x96xf32>
    %104 = vector.extract_strided_slice %97 {offsets = [0, 96], sizes = [1, 32], strides = [1, 1]} : vector<1x128xf32> to vector<1x32xf32>
    %105 = math.tanh %104 : vector<1x32xf32>
    %106 = vector.extract_strided_slice %103 {offsets = [0, 0], sizes = [1, 32], strides = [1, 1]} : vector<1x96xf32> to vector<1x32xf32>
    %107 = vector.extract_strided_slice %103 {offsets = [0, 32], sizes = [1, 32], strides = [1, 1]} : vector<1x96xf32> to vector<1x32xf32>
    %108 = vector.extract_strided_slice %103 {offsets = [0, 64], sizes = [1, 32], strides = [1, 1]} : vector<1x96xf32> to vector<1x32xf32>
    %109 = arith.mulf %107, %85 : vector<1x32xf32>
    %110 = arith.mulf %106, %105 : vector<1x32xf32>
    %111 = arith.addf %109, %110 : vector<1x32xf32>
    %112 = math.tanh %111 : vector<1x32xf32>
    %113 = arith.mulf %108, %112 : vector<1x32xf32>
    %114 = vector.extract_strided_slice %113 {offsets = [0, 0], sizes = [1, 16], strides = [1, 1]} : vector<1x32xf32> to vector<1x16xf32>
    %c2 = arith.constant 2 : index
    %c0_22 = arith.constant 0 : index
    %115 = vector.load %arg5[%c2, %c0_22] : memref<8x32xf32, #tpu.memory_space<vmem>>, vector<1x16xf32>
    tpu.vector_store %arg5[%c2, %c0_22], %114 {strides = array<i32>} : memref<8x32xf32, #tpu.memory_space<vmem>>, vector<1x16xf32>,
    %116 = vector.extract_strided_slice %113 {offsets = [0, 16], sizes = [1, 16], strides = [1, 1]} : vector<1x32xf32> to vector<1x16xf32>
    %c5 = arith.constant 5 : index
    %c16_23 = arith.constant 16 : index
    %117 = vector.load %arg5[%c5, %c16_23] : memref<8x32xf32, #tpu.memory_space<vmem>>, vector<1x16xf32>
    tpu.vector_store %arg5[%c5, %c16_23], %116 {strides = array<i32>} : memref<8x32xf32, #tpu.memory_space<vmem>>, vector<1x16xf32>,
    %118 = vector.extract_strided_slice %12 {offsets = [3, 0], sizes = [1, 128], strides = [1, 1]} : vector<8x128xf32> to vector<1x128xf32>
    %119 = vector.extract_strided_slice %12 {offsets = [4, 0], sizes = [1, 128], strides = [1, 1]} : vector<8x128xf32> to vector<1x128xf32>
    %120 = arith.select %39, %118, %119 : vector<1x128xi1>, vector<1x128xf32>
    %121 = arith.truncf %113 : vector<1x32xf32> to vector<1x32xbf16>
    %cst_24 = arith.constant dense<0.000000e+00> : vector<1x128xf32>
    %122 = tpu.matmul %121, %2, %cst_24 {dimension_numbers = #tpu.dot_dimension_numbers<[1], [0], [0], [1], [0, 0, 1, 1], [], []>} : vector<1x32xbf16>, vector<32x128xbf16>, vector<1x128xf32> -> vector<1x128xf32>
    %123 = arith.addf %120, %122 : vector<1x128xf32>
    %124 = vector.extract_strided_slice %123 {offsets = [0, 0], sizes = [1, 96], strides = [1, 1]} : vector<1x128xf32> to vector<1x96xf32>
    %125 = arith.negf %124 : vector<1x96xf32>
    %126 = math.exp %125 : vector<1x96xf32>
    %cst_25 = arith.constant 1.000000e+00 : f32
    %127 = vector.broadcast %cst_25 : f32 to vector<1x96xf32>
    %128 = arith.addf %127, %126 : vector<1x96xf32>
    %129 = arith.divf %127, %128 : vector<1x96xf32>
    %130 = vector.extract_strided_slice %123 {offsets = [0, 96], sizes = [1, 32], strides = [1, 1]} : vector<1x128xf32> to vector<1x32xf32>
    %131 = math.tanh %130 : vector<1x32xf32>
    %132 = vector.extract_strided_slice %129 {offsets = [0, 0], sizes = [1, 32], strides = [1, 1]} : vector<1x96xf32> to vector<1x32xf32>
    %133 = vector.extract_strided_slice %129 {offsets = [0, 32], sizes = [1, 32], strides = [1, 1]} : vector<1x96xf32> to vector<1x32xf32>
    %134 = vector.extract_strided_slice %129 {offsets = [0, 64], sizes = [1, 32], strides = [1, 1]} : vector<1x96xf32> to vector<1x32xf32>
    %135 = arith.mulf %133, %111 : vector<1x32xf32>
    %136 = arith.mulf %132, %131 : vector<1x32xf32>
    %137 = arith.addf %135, %136 : vector<1x32xf32>
    %138 = math.tanh %137 : vector<1x32xf32>
    %139 = arith.mulf %134, %138 : vector<1x32xf32>
    %140 = vector.extract_strided_slice %139 {offsets = [0, 0], sizes = [1, 16], strides = [1, 1]} : vector<1x32xf32> to vector<1x16xf32>
    %c3 = arith.constant 3 : index
    %c0_26 = arith.constant 0 : index
    %141 = vector.load %arg5[%c3, %c0_26] : memref<8x32xf32, #tpu.memory_space<vmem>>, vector<1x16xf32>
    tpu.vector_store %arg5[%c3, %c0_26], %140 {strides = array<i32>} : memref<8x32xf32, #tpu.memory_space<vmem>>, vector<1x16xf32>,
    %142 = vector.extract_strided_slice %139 {offsets = [0, 16], sizes = [1, 16], strides = [1, 1]} : vector<1x32xf32> to vector<1x16xf32>
    %c4 = arith.constant 4 : index
    %c16_27 = arith.constant 16 : index
    %143 = vector.load %arg5[%c4, %c16_27] : memref<8x32xf32, #tpu.memory_space<vmem>>, vector<1x16xf32>
    tpu.vector_store %arg5[%c4, %c16_27], %142 {strides = array<i32>} : memref<8x32xf32, #tpu.memory_space<vmem>>, vector<1x16xf32>,
    %144 = vector.extract_strided_slice %12 {offsets = [4, 0], sizes = [1, 128], strides = [1, 1]} : vector<8x128xf32> to vector<1x128xf32>
    %145 = vector.extract_strided_slice %12 {offsets = [3, 0], sizes = [1, 128], strides = [1, 1]} : vector<8x128xf32> to vector<1x128xf32>
    %146 = arith.select %39, %144, %145 : vector<1x128xi1>, vector<1x128xf32>
    %147 = arith.truncf %139 : vector<1x32xf32> to vector<1x32xbf16>
    %cst_28 = arith.constant dense<0.000000e+00> : vector<1x128xf32>
    %148 = tpu.matmul %147, %2, %cst_28 {dimension_numbers = #tpu.dot_dimension_numbers<[1], [0], [0], [1], [0, 0, 1, 1], [], []>} : vector<1x32xbf16>, vector<32x128xbf16>, vector<1x128xf32> -> vector<1x128xf32>
    %149 = arith.addf %146, %148 : vector<1x128xf32>
    %150 = vector.extract_strided_slice %149 {offsets = [0, 0], sizes = [1, 96], strides = [1, 1]} : vector<1x128xf32> to vector<1x96xf32>
    %151 = arith.negf %150 : vector<1x96xf32>
    %152 = math.exp %151 : vector<1x96xf32>
    %cst_29 = arith.constant 1.000000e+00 : f32
    %153 = vector.broadcast %cst_29 : f32 to vector<1x96xf32>
    %154 = arith.addf %153, %152 : vector<1x96xf32>
    %155 = arith.divf %153, %154 : vector<1x96xf32>
    %156 = vector.extract_strided_slice %149 {offsets = [0, 96], sizes = [1, 32], strides = [1, 1]} : vector<1x128xf32> to vector<1x32xf32>
    %157 = math.tanh %156 : vector<1x32xf32>
    %158 = vector.extract_strided_slice %155 {offsets = [0, 0], sizes = [1, 32], strides = [1, 1]} : vector<1x96xf32> to vector<1x32xf32>
    %159 = vector.extract_strided_slice %155 {offsets = [0, 32], sizes = [1, 32], strides = [1, 1]} : vector<1x96xf32> to vector<1x32xf32>
    %160 = vector.extract_strided_slice %155 {offsets = [0, 64], sizes = [1, 32], strides = [1, 1]} : vector<1x96xf32> to vector<1x32xf32>
    %161 = arith.mulf %159, %137 : vector<1x32xf32>
    %162 = arith.mulf %158, %157 : vector<1x32xf32>
    %163 = arith.addf %161, %162 : vector<1x32xf32>
    %164 = math.tanh %163 : vector<1x32xf32>
    %165 = arith.mulf %160, %164 : vector<1x32xf32>
    %166 = vector.extract_strided_slice %165 {offsets = [0, 0], sizes = [1, 16], strides = [1, 1]} : vector<1x32xf32> to vector<1x16xf32>
    %c4_30 = arith.constant 4 : index
    %c0_31 = arith.constant 0 : index
    %167 = vector.load %arg5[%c4_30, %c0_31] : memref<8x32xf32, #tpu.memory_space<vmem>>, vector<1x16xf32>
    tpu.vector_store %arg5[%c4_30, %c0_31], %166 {strides = array<i32>} : memref<8x32xf32, #tpu.memory_space<vmem>>, vector<1x16xf32>,
    %168 = vector.extract_strided_slice %165 {offsets = [0, 16], sizes = [1, 16], strides = [1, 1]} : vector<1x32xf32> to vector<1x16xf32>
    %c3_32 = arith.constant 3 : index
    %c16_33 = arith.constant 16 : index
    %169 = vector.load %arg5[%c3_32, %c16_33] : memref<8x32xf32, #tpu.memory_space<vmem>>, vector<1x16xf32>
    tpu.vector_store %arg5[%c3_32, %c16_33], %168 {strides = array<i32>} : memref<8x32xf32, #tpu.memory_space<vmem>>, vector<1x16xf32>,
    %170 = vector.extract_strided_slice %12 {offsets = [5, 0], sizes = [1, 128], strides = [1, 1]} : vector<8x128xf32> to vector<1x128xf32>
    %171 = vector.extract_strided_slice %12 {offsets = [2, 0], sizes = [1, 128], strides = [1, 1]} : vector<8x128xf32> to vector<1x128xf32>
    %172 = arith.select %39, %170, %171 : vector<1x128xi1>, vector<1x128xf32>
    %173 = arith.truncf %165 : vector<1x32xf32> to vector<1x32xbf16>
    %cst_34 = arith.constant dense<0.000000e+00> : vector<1x128xf32>
    %174 = tpu.matmul %173, %2, %cst_34 {dimension_numbers = #tpu.dot_dimension_numbers<[1], [0], [0], [1], [0, 0, 1, 1], [], []>} : vector<1x32xbf16>, vector<32x128xbf16>, vector<1x128xf32> -> vector<1x128xf32>
    %175 = arith.addf %172, %174 : vector<1x128xf32>
    %176 = vector.extract_strided_slice %175 {offsets = [0, 0], sizes = [1, 96], strides = [1, 1]} : vector<1x128xf32> to vector<1x96xf32>
    %177 = arith.negf %176 : vector<1x96xf32>
    %178 = math.exp %177 : vector<1x96xf32>
    %cst_35 = arith.constant 1.000000e+00 : f32
    %179 = vector.broadcast %cst_35 : f32 to vector<1x96xf32>
    %180 = arith.addf %179, %178 : vector<1x96xf32>
    %181 = arith.divf %179, %180 : vector<1x96xf32>
    %182 = vector.extract_strided_slice %175 {offsets = [0, 96], sizes = [1, 32], strides = [1, 1]} : vector<1x128xf32> to vector<1x32xf32>
    %183 = math.tanh %182 : vector<1x32xf32>
    %184 = vector.extract_strided_slice %181 {offsets = [0, 0], sizes = [1, 32], strides = [1, 1]} : vector<1x96xf32> to vector<1x32xf32>
    %185 = vector.extract_strided_slice %181 {offsets = [0, 32], sizes = [1, 32], strides = [1, 1]} : vector<1x96xf32> to vector<1x32xf32>
    %186 = vector.extract_strided_slice %181 {offsets = [0, 64], sizes = [1, 32], strides = [1, 1]} : vector<1x96xf32> to vector<1x32xf32>
    %187 = arith.mulf %185, %163 : vector<1x32xf32>
    %188 = arith.mulf %184, %183 : vector<1x32xf32>
    %189 = arith.addf %187, %188 : vector<1x32xf32>
    %190 = math.tanh %189 : vector<1x32xf32>
    %191 = arith.mulf %186, %190 : vector<1x32xf32>
    %192 = vector.extract_strided_slice %191 {offsets = [0, 0], sizes = [1, 16], strides = [1, 1]} : vector<1x32xf32> to vector<1x16xf32>
    %c5_36 = arith.constant 5 : index
    %c0_37 = arith.constant 0 : index
    %193 = vector.load %arg5[%c5_36, %c0_37] : memref<8x32xf32, #tpu.memory_space<vmem>>, vector<1x16xf32>
    tpu.vector_store %arg5[%c5_36, %c0_37], %192 {strides = array<i32>} : memref<8x32xf32, #tpu.memory_space<vmem>>, vector<1x16xf32>,
    %194 = vector.extract_strided_slice %191 {offsets = [0, 16], sizes = [1, 16], strides = [1, 1]} : vector<1x32xf32> to vector<1x16xf32>
    %c2_38 = arith.constant 2 : index
    %c16_39 = arith.constant 16 : index
    %195 = vector.load %arg5[%c2_38, %c16_39] : memref<8x32xf32, #tpu.memory_space<vmem>>, vector<1x16xf32>
    tpu.vector_store %arg5[%c2_38, %c16_39], %194 {strides = array<i32>} : memref<8x32xf32, #tpu.memory_space<vmem>>, vector<1x16xf32>,
    %196 = vector.extract_strided_slice %12 {offsets = [6, 0], sizes = [1, 128], strides = [1, 1]} : vector<8x128xf32> to vector<1x128xf32>
    %197 = vector.extract_strided_slice %12 {offsets = [1, 0], sizes = [1, 128], strides = [1, 1]} : vector<8x128xf32> to vector<1x128xf32>
    %198 = arith.select %39, %196, %197 : vector<1x128xi1>, vector<1x128xf32>
    %199 = arith.truncf %191 : vector<1x32xf32> to vector<1x32xbf16>
    %cst_40 = arith.constant dense<0.000000e+00> : vector<1x128xf32>
    %200 = tpu.matmul %199, %2, %cst_40 {dimension_numbers = #tpu.dot_dimension_numbers<[1], [0], [0], [1], [0, 0, 1, 1], [], []>} : vector<1x32xbf16>, vector<32x128xbf16>, vector<1x128xf32> -> vector<1x128xf32>
    %201 = arith.addf %198, %200 : vector<1x128xf32>
    %202 = vector.extract_strided_slice %201 {offsets = [0, 0], sizes = [1, 96], strides = [1, 1]} : vector<1x128xf32> to vector<1x96xf32>
    %203 = arith.negf %202 : vector<1x96xf32>
    %204 = math.exp %203 : vector<1x96xf32>
    %cst_41 = arith.constant 1.000000e+00 : f32
    %205 = vector.broadcast %cst_41 : f32 to vector<1x96xf32>
    %206 = arith.addf %205, %204 : vector<1x96xf32>
    %207 = arith.divf %205, %206 : vector<1x96xf32>
    %208 = vector.extract_strided_slice %201 {offsets = [0, 96], sizes = [1, 32], strides = [1, 1]} : vector<1x128xf32> to vector<1x32xf32>
    %209 = math.tanh %208 : vector<1x32xf32>
    %210 = vector.extract_strided_slice %207 {offsets = [0, 0], sizes = [1, 32], strides = [1, 1]} : vector<1x96xf32> to vector<1x32xf32>
    %211 = vector.extract_strided_slice %207 {offsets = [0, 32], sizes = [1, 32], strides = [1, 1]} : vector<1x96xf32> to vector<1x32xf32>
    %212 = vector.extract_strided_slice %207 {offsets = [0, 64], sizes = [1, 32], strides = [1, 1]} : vector<1x96xf32> to vector<1x32xf32>
    %213 = arith.mulf %211, %189 : vector<1x32xf32>
    %214 = arith.mulf %210, %209 : vector<1x32xf32>
    %215 = arith.addf %213, %214 : vector<1x32xf32>
    %216 = math.tanh %215 : vector<1x32xf32>
    %217 = arith.mulf %212, %216 : vector<1x32xf32>
    %218 = vector.extract_strided_slice %217 {offsets = [0, 0], sizes = [1, 16], strides = [1, 1]} : vector<1x32xf32> to vector<1x16xf32>
    %c6_42 = arith.constant 6 : index
    %c0_43 = arith.constant 0 : index
    %219 = vector.load %arg5[%c6_42, %c0_43] : memref<8x32xf32, #tpu.memory_space<vmem>>, vector<1x16xf32>
    tpu.vector_store %arg5[%c6_42, %c0_43], %218 {strides = array<i32>} : memref<8x32xf32, #tpu.memory_space<vmem>>, vector<1x16xf32>,
    %220 = vector.extract_strided_slice %217 {offsets = [0, 16], sizes = [1, 16], strides = [1, 1]} : vector<1x32xf32> to vector<1x16xf32>
    %c1_44 = arith.constant 1 : index
    %c16_45 = arith.constant 16 : index
    %221 = vector.load %arg5[%c1_44, %c16_45] : memref<8x32xf32, #tpu.memory_space<vmem>>, vector<1x16xf32>
    tpu.vector_store %arg5[%c1_44, %c16_45], %220 {strides = array<i32>} : memref<8x32xf32, #tpu.memory_space<vmem>>, vector<1x16xf32>,
    %222 = vector.extract_strided_slice %12 {offsets = [7, 0], sizes = [1, 128], strides = [1, 1]} : vector<8x128xf32> to vector<1x128xf32>
    %223 = vector.extract_strided_slice %12 {offsets = [0, 0], sizes = [1, 128], strides = [1, 1]} : vector<8x128xf32> to vector<1x128xf32>
    %224 = arith.select %39, %222, %223 : vector<1x128xi1>, vector<1x128xf32>
    %225 = arith.truncf %217 : vector<1x32xf32> to vector<1x32xbf16>
    %cst_46 = arith.constant dense<0.000000e+00> : vector<1x128xf32>
    %226 = tpu.matmul %225, %2, %cst_46 {dimension_numbers = #tpu.dot_dimension_numbers<[1], [0], [0], [1], [0, 0, 1, 1], [], []>} : vector<1x32xbf16>, vector<32x128xbf16>, vector<1x128xf32> -> vector<1x128xf32>
    %227 = arith.addf %224, %226 : vector<1x128xf32>
    %228 = vector.extract_strided_slice %227 {offsets = [0, 0], sizes = [1, 96], strides = [1, 1]} : vector<1x128xf32> to vector<1x96xf32>
    %229 = arith.negf %228 : vector<1x96xf32>
    %230 = math.exp %229 : vector<1x96xf32>
    %cst_47 = arith.constant 1.000000e+00 : f32
    %231 = vector.broadcast %cst_47 : f32 to vector<1x96xf32>
    %232 = arith.addf %231, %230 : vector<1x96xf32>
    %233 = arith.divf %231, %232 : vector<1x96xf32>
    %234 = vector.extract_strided_slice %227 {offsets = [0, 96], sizes = [1, 32], strides = [1, 1]} : vector<1x128xf32> to vector<1x32xf32>
    %235 = math.tanh %234 : vector<1x32xf32>
    %236 = vector.extract_strided_slice %233 {offsets = [0, 0], sizes = [1, 32], strides = [1, 1]} : vector<1x96xf32> to vector<1x32xf32>
    %237 = vector.extract_strided_slice %233 {offsets = [0, 32], sizes = [1, 32], strides = [1, 1]} : vector<1x96xf32> to vector<1x32xf32>
    %238 = vector.extract_strided_slice %233 {offsets = [0, 64], sizes = [1, 32], strides = [1, 1]} : vector<1x96xf32> to vector<1x32xf32>
    %239 = arith.mulf %237, %215 : vector<1x32xf32>
    %240 = arith.mulf %236, %235 : vector<1x32xf32>
    %241 = arith.addf %239, %240 : vector<1x32xf32>
    %242 = math.tanh %241 : vector<1x32xf32>
    %243 = arith.mulf %238, %242 : vector<1x32xf32>
    %244 = vector.extract_strided_slice %243 {offsets = [0, 0], sizes = [1, 16], strides = [1, 1]} : vector<1x32xf32> to vector<1x16xf32>
    %c7_48 = arith.constant 7 : index
    %c0_49 = arith.constant 0 : index
    %245 = vector.load %arg5[%c7_48, %c0_49] : memref<8x32xf32, #tpu.memory_space<vmem>>, vector<1x16xf32>
    tpu.vector_store %arg5[%c7_48, %c0_49], %244 {strides = array<i32>} : memref<8x32xf32, #tpu.memory_space<vmem>>, vector<1x16xf32>,
    %246 = vector.extract_strided_slice %243 {offsets = [0, 16], sizes = [1, 16], strides = [1, 1]} : vector<1x32xf32> to vector<1x16xf32>
    %c0_50 = arith.constant 0 : index
    %c16_51 = arith.constant 16 : index
    %247 = vector.load %arg5[%c0_50, %c16_51] : memref<8x32xf32, #tpu.memory_space<vmem>>, vector<1x16xf32>
    tpu.vector_store %arg5[%c0_50, %c16_51], %246 {strides = array<i32>} : memref<8x32xf32, #tpu.memory_space<vmem>>, vector<1x16xf32>,
    %c0_52 = arith.constant 0 : index
    %c0_53 = arith.constant 0 : index
    %248 = vector.load %arg5[%c0_52, %c0_53] : memref<8x32xf32, #tpu.memory_space<vmem>>, vector<8x32xf32>
    %cst_54 = arith.constant dense<0.000000e+00> : vector<8x5xf32>
    %249 = tpu.matmul %248, %6, %cst_54 {dimension_numbers = #tpu.dot_dimension_numbers<[1], [0], [0], [1], [0, 0, 1, 1], [], []>} : vector<8x32xf32>, vector<32x5xf32>, vector<8x5xf32> -> vector<8x5xf32>
    %250 = vector.broadcast %7 : vector<1x5xf32> to vector<8x5xf32>
    %251 = arith.addf %249, %250 : vector<8x5xf32>
    %c0_55 = arith.constant 0 : index
    %c0_56 = arith.constant 0 : index
    %252 = vector.load %arg2[%c0_55, %c0_56] : memref<8x5xf32, #tpu.memory_space<vmem>>, vector<8x5xf32>
    tpu.vector_store %arg2[%c0_55, %c0_56], %251 {strides = array<i32>} : memref<8x5xf32, #tpu.memory_space<vmem>>, vector<8x5xf32>,
    %253 = tpu.iota {dimensions = array<i32: 0>} : vector<5x5xi32>
    %254 = tpu.iota {dimensions = array<i32: 1>} : vector<5x5xi32>
    %255 = arith.cmpi eq, %253, %254 : vector<5x5xi32>
    %256 = arith.extui %255 : vector<5x5xi1> to vector<5x5xi32>
    %257 = arith.sitofp %256 : vector<5x5xi32> to vector<5x5xf32>
    %258 = tpu.iota {dimensions = array<i32: 0>} : vector<5x1xi32>
    %c3_i32 = arith.constant 3 : i32
    %259 = vector.broadcast %c3_i32 : i32 to vector<5x1xi32>
    %260 = arith.cmpi eq, %258, %259 : vector<5x1xi32>
    %cst_57 = arith.constant 0.000000e+00 : f32
    %cst_58 = arith.constant -1.000000e+04 : f32
    %261 = vector.broadcast %cst_57 : f32 to vector<5x1xf32>
    %262 = vector.broadcast %cst_58 : f32 to vector<5x1xf32>
    %263 = arith.select %260, %261, %262 : vector<5x1xi1>, vector<5x1xf32>
    %264 = vector.broadcast %263 : vector<5x1xf32> to vector<5x5xf32>
    %265 = arith.addf %8, %264 : vector<5x5xf32>
    %cst_59 = arith.constant dense<0xFF800000> : vector<5xf32>
    %266 = vector.multi_reduction <maximumf>, %265, %cst_59 [0] : vector<5x5xf32> to vector<5xf32>
    %267 = vector.shape_cast %266 : vector<5xf32> to vector<1x5xf32>
    %268 = vector.broadcast %267 : vector<1x5xf32> to vector<5x5xf32>
    %269 = arith.cmpf oeq, %265, %268 : vector<5x5xf32>
    %c5_i32 = arith.constant 5 : i32
    %270 = vector.broadcast %c5_i32 : i32 to vector<5x5xi32>
    %271 = arith.select %269, %253, %270 : vector<5x5xi1>, vector<5x5xi32>
    %cst_60 = arith.constant dense<2147483647> : vector<5xi32>
    %272 = vector.multi_reduction <minsi>, %271, %cst_60 [0] : vector<5x5xi32> to vector<5xi32>
    %273 = vector.shape_cast %272 : vector<5xi32> to vector<1x5xi32>
    %c0_61 = arith.constant 0 : index
    %c0_62 = arith.constant 0 : index
    %274 = vector.load %arg6[%c0_61, %c0_62] : memref<8x5xi32, #tpu.memory_space<vmem>>, vector<1x5xi32>
    tpu.vector_store %arg6[%c0_61, %c0_62], %273 {strides = array<i32>} : memref<8x5xi32, #tpu.memory_space<vmem>>, vector<1x5xi32>,
    %275 = vector.extract_strided_slice %251 {offsets = [0, 0], sizes = [1, 5], strides = [1, 1]} : vector<8x5xf32> to vector<1x5xf32>
    %276 = arith.addf %267, %275 : vector<1x5xf32>
    %277 = vector.broadcast %276 : vector<1x5xf32> to vector<5x5xf32>
    %278 = arith.mulf %257, %277 : vector<5x5xf32>
    %cst_63 = arith.constant dense<0.000000e+00> : vector<5xf32>
    %279 = vector.multi_reduction <add>, %278, %cst_63 [1] : vector<5x5xf32> to vector<5xf32>
    %280 = vector.shape_cast %279 : vector<5xf32> to vector<5x1xf32>
    %281 = vector.broadcast %280 : vector<5x1xf32> to vector<5x5xf32>
    %282 = arith.addf %8, %281 : vector<5x5xf32>
    %cst_64 = arith.constant dense<0xFF800000> : vector<5xf32>
    %283 = vector.multi_reduction <maximumf>, %282, %cst_64 [0] : vector<5x5xf32> to vector<5xf32>
    %284 = vector.shape_cast %283 : vector<5xf32> to vector<1x5xf32>
    %285 = vector.broadcast %284 : vector<1x5xf32> to vector<5x5xf32>
    %286 = arith.cmpf oeq, %282, %285 : vector<5x5xf32>
    %c5_i32_65 = arith.constant 5 : i32
    %287 = vector.broadcast %c5_i32_65 : i32 to vector<5x5xi32>
    %288 = arith.select %286, %253, %287 : vector<5x5xi1>, vector<5x5xi32>
    %cst_66 = arith.constant dense<2147483647> : vector<5xi32>
    %289 = vector.multi_reduction <minsi>, %288, %cst_66 [0] : vector<5x5xi32> to vector<5xi32>
    %290 = vector.shape_cast %289 : vector<5xi32> to vector<1x5xi32>
    %c1_67 = arith.constant 1 : index
    %c0_68 = arith.constant 0 : index
    %291 = vector.load %arg6[%c1_67, %c0_68] : memref<8x5xi32, #tpu.memory_space<vmem>>, vector<1x5xi32>
    tpu.vector_store %arg6[%c1_67, %c0_68], %290 {strides = array<i32>} : memref<8x5xi32, #tpu.memory_space<vmem>>, vector<1x5xi32>,
    %292 = vector.extract_strided_slice %251 {offsets = [1, 0], sizes = [1, 5], strides = [1, 1]} : vector<8x5xf32> to vector<1x5xf32>
    %293 = arith.addf %284, %292 : vector<1x5xf32>
    %294 = vector.broadcast %293 : vector<1x5xf32> to vector<5x5xf32>
    %295 = arith.mulf %257, %294 : vector<5x5xf32>
    %cst_69 = arith.constant dense<0.000000e+00> : vector<5xf32>
    %296 = vector.multi_reduction <add>, %295, %cst_69 [1] : vector<5x5xf32> to vector<5xf32>
    %297 = vector.shape_cast %296 : vector<5xf32> to vector<5x1xf32>
    %298 = vector.broadcast %297 : vector<5x1xf32> to vector<5x5xf32>
    %299 = arith.addf %8, %298 : vector<5x5xf32>
    %cst_70 = arith.constant dense<0xFF800000> : vector<5xf32>
    %300 = vector.multi_reduction <maximumf>, %299, %cst_70 [0] : vector<5x5xf32> to vector<5xf32>
    %301 = vector.shape_cast %300 : vector<5xf32> to vector<1x5xf32>
    %302 = vector.broadcast %301 : vector<1x5xf32> to vector<5x5xf32>
    %303 = arith.cmpf oeq, %299, %302 : vector<5x5xf32>
    %c5_i32_71 = arith.constant 5 : i32
    %304 = vector.broadcast %c5_i32_71 : i32 to vector<5x5xi32>
    %305 = arith.select %303, %253, %304 : vector<5x5xi1>, vector<5x5xi32>
    %cst_72 = arith.constant dense<2147483647> : vector<5xi32>
    %306 = vector.multi_reduction <minsi>, %305, %cst_72 [0] : vector<5x5xi32> to vector<5xi32>
    %307 = vector.shape_cast %306 : vector<5xi32> to vector<1x5xi32>
    %c2_73 = arith.constant 2 : index
    %c0_74 = arith.constant 0 : index
    %308 = vector.load %arg6[%c2_73, %c0_74] : memref<8x5xi32, #tpu.memory_space<vmem>>, vector<1x5xi32>
    tpu.vector_store %arg6[%c2_73, %c0_74], %307 {strides = array<i32>} : memref<8x5xi32, #tpu.memory_space<vmem>>, vector<1x5xi32>,
    %309 = vector.extract_strided_slice %251 {offsets = [2, 0], sizes = [1, 5], strides = [1, 1]} : vector<8x5xf32> to vector<1x5xf32>
    %310 = arith.addf %301, %309 : vector<1x5xf32>
    %311 = vector.broadcast %310 : vector<1x5xf32> to vector<5x5xf32>
    %312 = arith.mulf %257, %311 : vector<5x5xf32>
    %cst_75 = arith.constant dense<0.000000e+00> : vector<5xf32>
    %313 = vector.multi_reduction <add>, %312, %cst_75 [1] : vector<5x5xf32> to vector<5xf32>
    %314 = vector.shape_cast %313 : vector<5xf32> to vector<5x1xf32>
    %315 = vector.broadcast %314 : vector<5x1xf32> to vector<5x5xf32>
    %316 = arith.addf %8, %315 : vector<5x5xf32>
    %cst_76 = arith.constant dense<0xFF800000> : vector<5xf32>
    %317 = vector.multi_reduction <maximumf>, %316, %cst_76 [0] : vector<5x5xf32> to vector<5xf32>
    %318 = vector.shape_cast %317 : vector<5xf32> to vector<1x5xf32>
    %319 = vector.broadcast %318 : vector<1x5xf32> to vector<5x5xf32>
    %320 = arith.cmpf oeq, %316, %319 : vector<5x5xf32>
    %c5_i32_77 = arith.constant 5 : i32
    %321 = vector.broadcast %c5_i32_77 : i32 to vector<5x5xi32>
    %322 = arith.select %320, %253, %321 : vector<5x5xi1>, vector<5x5xi32>
    %cst_78 = arith.constant dense<2147483647> : vector<5xi32>
    %323 = vector.multi_reduction <minsi>, %322, %cst_78 [0] : vector<5x5xi32> to vector<5xi32>
    %324 = vector.shape_cast %323 : vector<5xi32> to vector<1x5xi32>
    %c3_79 = arith.constant 3 : index
    %c0_80 = arith.constant 0 : index
    %325 = vector.load %arg6[%c3_79, %c0_80] : memref<8x5xi32, #tpu.memory_space<vmem>>, vector<1x5xi32>
    tpu.vector_store %arg6[%c3_79, %c0_80], %324 {strides = array<i32>} : memref<8x5xi32, #tpu.memory_space<vmem>>, vector<1x5xi32>,
    %326 = vector.extract_strided_slice %251 {offsets = [3, 0], sizes = [1, 5], strides = [1, 1]} : vector<8x5xf32> to vector<1x5xf32>
    %327 = arith.addf %318, %326 : vector<1x5xf32>
    %328 = vector.broadcast %327 : vector<1x5xf32> to vector<5x5xf32>
    %329 = arith.mulf %257, %328 : vector<5x5xf32>
    %cst_81 = arith.constant dense<0.000000e+00> : vector<5xf32>
    %330 = vector.multi_reduction <add>, %329, %cst_81 [1] : vector<5x5xf32> to vector<5xf32>
    %331 = vector.shape_cast %330 : vector<5xf32> to vector<5x1xf32>
    %332 = vector.broadcast %331 : vector<5x1xf32> to vector<5x5xf32>
    %333 = arith.addf %8, %332 : vector<5x5xf32>
    %cst_82 = arith.constant dense<0xFF800000> : vector<5xf32>
    %334 = vector.multi_reduction <maximumf>, %333, %cst_82 [0] : vector<5x5xf32> to vector<5xf32>
    %335 = vector.shape_cast %334 : vector<5xf32> to vector<1x5xf32>
    %336 = vector.broadcast %335 : vector<1x5xf32> to vector<5x5xf32>
    %337 = arith.cmpf oeq, %333, %336 : vector<5x5xf32>
    %c5_i32_83 = arith.constant 5 : i32
    %338 = vector.broadcast %c5_i32_83 : i32 to vector<5x5xi32>
    %339 = arith.select %337, %253, %338 : vector<5x5xi1>, vector<5x5xi32>
    %cst_84 = arith.constant dense<2147483647> : vector<5xi32>
    %340 = vector.multi_reduction <minsi>, %339, %cst_84 [0] : vector<5x5xi32> to vector<5xi32>
    %341 = vector.shape_cast %340 : vector<5xi32> to vector<1x5xi32>
    %c4_85 = arith.constant 4 : index
    %c0_86 = arith.constant 0 : index
    %342 = vector.load %arg6[%c4_85, %c0_86] : memref<8x5xi32, #tpu.memory_space<vmem>>, vector<1x5xi32>
    tpu.vector_store %arg6[%c4_85, %c0_86], %341 {strides = array<i32>} : memref<8x5xi32, #tpu.memory_space<vmem>>, vector<1x5xi32>,
    %343 = vector.extract_strided_slice %251 {offsets = [4, 0], sizes = [1, 5], strides = [1, 1]} : vector<8x5xf32> to vector<1x5xf32>
    %344 = arith.addf %335, %343 : vector<1x5xf32>
    %345 = vector.broadcast %344 : vector<1x5xf32> to vector<5x5xf32>
    %346 = arith.mulf %257, %345 : vector<5x5xf32>
    %cst_87 = arith.constant dense<0.000000e+00> : vector<5xf32>
    %347 = vector.multi_reduction <add>, %346, %cst_87 [1] : vector<5x5xf32> to vector<5xf32>
    %348 = vector.shape_cast %347 : vector<5xf32> to vector<5x1xf32>
    %349 = vector.broadcast %348 : vector<5x1xf32> to vector<5x5xf32>
    %350 = arith.addf %8, %349 : vector<5x5xf32>
    %cst_88 = arith.constant dense<0xFF800000> : vector<5xf32>
    %351 = vector.multi_reduction <maximumf>, %350, %cst_88 [0] : vector<5x5xf32> to vector<5xf32>
    %352 = vector.shape_cast %351 : vector<5xf32> to vector<1x5xf32>
    %353 = vector.broadcast %352 : vector<1x5xf32> to vector<5x5xf32>
    %354 = arith.cmpf oeq, %350, %353 : vector<5x5xf32>
    %c5_i32_89 = arith.constant 5 : i32
    %355 = vector.broadcast %c5_i32_89 : i32 to vector<5x5xi32>
    %356 = arith.select %354, %253, %355 : vector<5x5xi1>, vector<5x5xi32>
    %cst_90 = arith.constant dense<2147483647> : vector<5xi32>
    %357 = vector.multi_reduction <minsi>, %356, %cst_90 [0] : vector<5x5xi32> to vector<5xi32>
    %358 = vector.shape_cast %357 : vector<5xi32> to vector<1x5xi32>
    %c5_91 = arith.constant 5 : index
    %c0_92 = arith.constant 0 : index
    %359 = vector.load %arg6[%c5_91, %c0_92] : memref<8x5xi32, #tpu.memory_space<vmem>>, vector<1x5xi32>
    tpu.vector_store %arg6[%c5_91, %c0_92], %358 {strides = array<i32>} : memref<8x5xi32, #tpu.memory_space<vmem>>, vector<1x5xi32>,
    %360 = vector.extract_strided_slice %251 {offsets = [5, 0], sizes = [1, 5], strides = [1, 1]} : vector<8x5xf32> to vector<1x5xf32>
    %361 = arith.addf %352, %360 : vector<1x5xf32>
    %362 = vector.broadcast %361 : vector<1x5xf32> to vector<5x5xf32>
    %363 = arith.mulf %257, %362 : vector<5x5xf32>
    %cst_93 = arith.constant dense<0.000000e+00> : vector<5xf32>
    %364 = vector.multi_reduction <add>, %363, %cst_93 [1] : vector<5x5xf32> to vector<5xf32>
    %365 = vector.shape_cast %364 : vector<5xf32> to vector<5x1xf32>
    %366 = vector.broadcast %365 : vector<5x1xf32> to vector<5x5xf32>
    %367 = arith.addf %8, %366 : vector<5x5xf32>
    %cst_94 = arith.constant dense<0xFF800000> : vector<5xf32>
    %368 = vector.multi_reduction <maximumf>, %367, %cst_94 [0] : vector<5x5xf32> to vector<5xf32>
    %369 = vector.shape_cast %368 : vector<5xf32> to vector<1x5xf32>
    %370 = vector.broadcast %369 : vector<1x5xf32> to vector<5x5xf32>
    %371 = arith.cmpf oeq, %367, %370 : vector<5x5xf32>
    %c5_i32_95 = arith.constant 5 : i32
    %372 = vector.broadcast %c5_i32_95 : i32 to vector<5x5xi32>
    %373 = arith.select %371, %253, %372 : vector<5x5xi1>, vector<5x5xi32>
    %cst_96 = arith.constant dense<2147483647> : vector<5xi32>
    %374 = vector.multi_reduction <minsi>, %373, %cst_96 [0] : vector<5x5xi32> to vector<5xi32>
    %375 = vector.shape_cast %374 : vector<5xi32> to vector<1x5xi32>
    %c6_97 = arith.constant 6 : index
    %c0_98 = arith.constant 0 : index
    %376 = vector.load %arg6[%c6_97, %c0_98] : memref<8x5xi32, #tpu.memory_space<vmem>>, vector<1x5xi32>
    tpu.vector_store %arg6[%c6_97, %c0_98], %375 {strides = array<i32>} : memref<8x5xi32, #tpu.memory_space<vmem>>, vector<1x5xi32>,
    %377 = vector.extract_strided_slice %251 {offsets = [6, 0], sizes = [1, 5], strides = [1, 1]} : vector<8x5xf32> to vector<1x5xf32>
    %378 = arith.addf %369, %377 : vector<1x5xf32>
    %379 = vector.broadcast %378 : vector<1x5xf32> to vector<5x5xf32>
    %380 = arith.mulf %257, %379 : vector<5x5xf32>
    %cst_99 = arith.constant dense<0.000000e+00> : vector<5xf32>
    %381 = vector.multi_reduction <add>, %380, %cst_99 [1] : vector<5x5xf32> to vector<5xf32>
    %382 = vector.shape_cast %381 : vector<5xf32> to vector<5x1xf32>
    %383 = vector.broadcast %382 : vector<5x1xf32> to vector<5x5xf32>
    %384 = arith.addf %8, %383 : vector<5x5xf32>
    %cst_100 = arith.constant dense<0xFF800000> : vector<5xf32>
    %385 = vector.multi_reduction <maximumf>, %384, %cst_100 [0] : vector<5x5xf32> to vector<5xf32>
    %386 = vector.shape_cast %385 : vector<5xf32> to vector<1x5xf32>
    %387 = vector.broadcast %386 : vector<1x5xf32> to vector<5x5xf32>
    %388 = arith.cmpf oeq, %384, %387 : vector<5x5xf32>
    %c5_i32_101 = arith.constant 5 : i32
    %389 = vector.broadcast %c5_i32_101 : i32 to vector<5x5xi32>
    %390 = arith.select %388, %253, %389 : vector<5x5xi1>, vector<5x5xi32>
    %cst_102 = arith.constant dense<2147483647> : vector<5xi32>
    %391 = vector.multi_reduction <minsi>, %390, %cst_102 [0] : vector<5x5xi32> to vector<5xi32>
    %392 = vector.shape_cast %391 : vector<5xi32> to vector<1x5xi32>
    %c7_103 = arith.constant 7 : index
    %c0_104 = arith.constant 0 : index
    %393 = vector.load %arg6[%c7_103, %c0_104] : memref<8x5xi32, #tpu.memory_space<vmem>>, vector<1x5xi32>
    tpu.vector_store %arg6[%c7_103, %c0_104], %392 {strides = array<i32>} : memref<8x5xi32, #tpu.memory_space<vmem>>, vector<1x5xi32>,
    %394 = vector.extract_strided_slice %251 {offsets = [7, 0], sizes = [1, 5], strides = [1, 1]} : vector<8x5xf32> to vector<1x5xf32>
    %395 = arith.addf %386, %394 : vector<1x5xf32>
    %396 = vector.broadcast %395 : vector<1x5xf32> to vector<5x5xf32>
    %397 = arith.mulf %257, %396 : vector<5x5xf32>
    %cst_105 = arith.constant dense<0.000000e+00> : vector<5xf32>
    %398 = vector.multi_reduction <add>, %397, %cst_105 [1] : vector<5x5xf32> to vector<5xf32>
    %399 = vector.shape_cast %398 : vector<5xf32> to vector<5x1xf32>
    %400 = vector.extract_strided_slice %8 {offsets = [0, 4], sizes = [5, 1], strides = [1, 1]} : vector<5x5xf32> to vector<5x1xf32>
    %401 = arith.addf %399, %400 : vector<5x1xf32>
    %cst_106 = arith.constant dense<0xFF800000> : vector<1xf32>
    %402 = vector.multi_reduction <maximumf>, %401, %cst_106 [0] : vector<5x1xf32> to vector<1xf32>
    %403 = vector.shape_cast %402 : vector<1xf32> to vector<1x1xf32>
    %404 = vector.broadcast %403 : vector<1x1xf32> to vector<5x1xf32>
    %405 = arith.cmpf oeq, %401, %404 : vector<5x1xf32>
    %c5_i32_107 = arith.constant 5 : i32
    %406 = vector.broadcast %c5_i32_107 : i32 to vector<5x1xi32>
    %407 = arith.select %405, %258, %406 : vector<5x1xi1>, vector<5x1xi32>
    %cst_108 = arith.constant dense<2147483647> : vector<1xi32>
    %408 = vector.multi_reduction <minsi>, %407, %cst_108 [0] : vector<5x1xi32> to vector<1xi32>
    %409 = vector.shape_cast %408 : vector<1xi32> to vector<1x1xi32>
    %c0_109 = arith.constant 0 : index
    %c0_110 = arith.constant 0 : index
    %410 = vector.load %arg4[%c0_109, %c0_110] : memref<1x1xf32, #tpu.memory_space<vmem>>, vector<1x1xf32>
    tpu.vector_store %arg4[%c0_109, %c0_110], %403 {strides = array<i32>} : memref<1x1xf32, #tpu.memory_space<vmem>>, vector<1x1xf32>,
    %411 = tpu.iota {dimensions = array<i32: 1>} : vector<1x5xi32>
    %412 = tpu.iota {dimensions = array<i32: 1>} : vector<1x8xi32>
    %c7_i32 = arith.constant 7 : i32
    %413 = vector.broadcast %c7_i32 : i32 to vector<1x8xi32>
    %414 = arith.cmpi eq, %412, %413 : vector<1x8xi32>
    %c0_i32_111 = arith.constant 0 : i32
    %415 = vector.shape_cast %409 : vector<1x1xi32> to vector<1x1xi32>
    %416 = vector.broadcast %415 : vector<1x1xi32> to vector<1x8xi32>
    %417 = vector.broadcast %c0_i32_111 : i32 to vector<1x8xi32>
    %418 = arith.select %414, %416, %417 : vector<1x8xi1>, vector<1x8xi32>
    %419 = vector.broadcast %409 : vector<1x1xi32> to vector<1x5xi32>
    %420 = arith.cmpi eq, %411, %419 : vector<1x5xi32>
    %c7_112 = arith.constant 7 : index
    %c0_113 = arith.constant 0 : index
    %421 = vector.load %arg6[%c7_112, %c0_113] : memref<8x5xi32, #tpu.memory_space<vmem>>, vector<1x5xi32>
    %c0_i32_114 = arith.constant 0 : i32
    %422 = vector.broadcast %c0_i32_114 : i32 to vector<1x5xi32>
    %423 = arith.select %420, %421, %422 : vector<1x5xi1>, vector<1x5xi32>
    %cst_115 = arith.constant dense<0> : vector<1xi32>
    %424 = vector.multi_reduction <add>, %423, %cst_115 [1] : vector<1x5xi32> to vector<1xi32>
    %425 = vector.shape_cast %424 : vector<1xi32> to vector<1x1xi32>
    %c6_i32 = arith.constant 6 : i32
    %426 = vector.broadcast %c6_i32 : i32 to vector<1x8xi32>
    %427 = arith.cmpi eq, %412, %426 : vector<1x8xi32>
    %428 = vector.shape_cast %425 : vector<1x1xi32> to vector<1x1xi32>
    %429 = vector.broadcast %428 : vector<1x1xi32> to vector<1x8xi32>
    %430 = arith.select %427, %429, %418 : vector<1x8xi1>, vector<1x8xi32>
    %431 = vector.broadcast %425 : vector<1x1xi32> to vector<1x5xi32>
    %432 = arith.cmpi eq, %411, %431 : vector<1x5xi32>
    %c6_116 = arith.constant 6 : index
    %c0_117 = arith.constant 0 : index
    %433 = vector.load %arg6[%c6_116, %c0_117] : memref<8x5xi32, #tpu.memory_space<vmem>>, vector<1x5xi32>
    %c0_i32_118 = arith.constant 0 : i32
    %434 = vector.broadcast %c0_i32_118 : i32 to vector<1x5xi32>
    %435 = arith.select %432, %433, %434 : vector<1x5xi1>, vector<1x5xi32>
    %cst_119 = arith.constant dense<0> : vector<1xi32>
    %436 = vector.multi_reduction <add>, %435, %cst_119 [1] : vector<1x5xi32> to vector<1xi32>
    %437 = vector.shape_cast %436 : vector<1xi32> to vector<1x1xi32>
    %c5_i32_120 = arith.constant 5 : i32
    %438 = vector.broadcast %c5_i32_120 : i32 to vector<1x8xi32>
    %439 = arith.cmpi eq, %412, %438 : vector<1x8xi32>
    %440 = vector.shape_cast %437 : vector<1x1xi32> to vector<1x1xi32>
    %441 = vector.broadcast %440 : vector<1x1xi32> to vector<1x8xi32>
    %442 = arith.select %439, %441, %430 : vector<1x8xi1>, vector<1x8xi32>
    %443 = vector.broadcast %437 : vector<1x1xi32> to vector<1x5xi32>
    %444 = arith.cmpi eq, %411, %443 : vector<1x5xi32>
    %c5_121 = arith.constant 5 : index
    %c0_122 = arith.constant 0 : index
    %445 = vector.load %arg6[%c5_121, %c0_122] : memref<8x5xi32, #tpu.memory_space<vmem>>, vector<1x5xi32>
    %c0_i32_123 = arith.constant 0 : i32
    %446 = vector.broadcast %c0_i32_123 : i32 to vector<1x5xi32>
    %447 = arith.select %444, %445, %446 : vector<1x5xi1>, vector<1x5xi32>
    %cst_124 = arith.constant dense<0> : vector<1xi32>
    %448 = vector.multi_reduction <add>, %447, %cst_124 [1] : vector<1x5xi32> to vector<1xi32>
    %449 = vector.shape_cast %448 : vector<1xi32> to vector<1x1xi32>
    %c4_i32 = arith.constant 4 : i32
    %450 = vector.broadcast %c4_i32 : i32 to vector<1x8xi32>
    %451 = arith.cmpi eq, %412, %450 : vector<1x8xi32>
    %452 = vector.shape_cast %449 : vector<1x1xi32> to vector<1x1xi32>
    %453 = vector.broadcast %452 : vector<1x1xi32> to vector<1x8xi32>
    %454 = arith.select %451, %453, %442 : vector<1x8xi1>, vector<1x8xi32>
    %455 = vector.broadcast %449 : vector<1x1xi32> to vector<1x5xi32>
    %456 = arith.cmpi eq, %411, %455 : vector<1x5xi32>
    %c4_125 = arith.constant 4 : index
    %c0_126 = arith.constant 0 : index
    %457 = vector.load %arg6[%c4_125, %c0_126] : memref<8x5xi32, #tpu.memory_space<vmem>>, vector<1x5xi32>
    %c0_i32_127 = arith.constant 0 : i32
    %458 = vector.broadcast %c0_i32_127 : i32 to vector<1x5xi32>
    %459 = arith.select %456, %457, %458 : vector<1x5xi1>, vector<1x5xi32>
    %cst_128 = arith.constant dense<0> : vector<1xi32>
    %460 = vector.multi_reduction <add>, %459, %cst_128 [1] : vector<1x5xi32> to vector<1xi32>
    %461 = vector.shape_cast %460 : vector<1xi32> to vector<1x1xi32>
    %c3_i32_129 = arith.constant 3 : i32
    %462 = vector.broadcast %c3_i32_129 : i32 to vector<1x8xi32>
    %463 = arith.cmpi eq, %412, %462 : vector<1x8xi32>
    %464 = vector.shape_cast %461 : vector<1x1xi32> to vector<1x1xi32>
    %465 = vector.broadcast %464 : vector<1x1xi32> to vector<1x8xi32>
    %466 = arith.select %463, %465, %454 : vector<1x8xi1>, vector<1x8xi32>
    %467 = vector.broadcast %461 : vector<1x1xi32> to vector<1x5xi32>
    %468 = arith.cmpi eq, %411, %467 : vector<1x5xi32>
    %c3_130 = arith.constant 3 : index
    %c0_131 = arith.constant 0 : index
    %469 = vector.load %arg6[%c3_130, %c0_131] : memref<8x5xi32, #tpu.memory_space<vmem>>, vector<1x5xi32>
    %c0_i32_132 = arith.constant 0 : i32
    %470 = vector.broadcast %c0_i32_132 : i32 to vector<1x5xi32>
    %471 = arith.select %468, %469, %470 : vector<1x5xi1>, vector<1x5xi32>
    %cst_133 = arith.constant dense<0> : vector<1xi32>
    %472 = vector.multi_reduction <add>, %471, %cst_133 [1] : vector<1x5xi32> to vector<1xi32>
    %473 = vector.shape_cast %472 : vector<1xi32> to vector<1x1xi32>
    %c2_i32 = arith.constant 2 : i32
    %474 = vector.broadcast %c2_i32 : i32 to vector<1x8xi32>
    %475 = arith.cmpi eq, %412, %474 : vector<1x8xi32>
    %476 = vector.shape_cast %473 : vector<1x1xi32> to vector<1x1xi32>
    %477 = vector.broadcast %476 : vector<1x1xi32> to vector<1x8xi32>
    %478 = arith.select %475, %477, %466 : vector<1x8xi1>, vector<1x8xi32>
    %479 = vector.broadcast %473 : vector<1x1xi32> to vector<1x5xi32>
    %480 = arith.cmpi eq, %411, %479 : vector<1x5xi32>
    %c2_134 = arith.constant 2 : index
    %c0_135 = arith.constant 0 : index
    %481 = vector.load %arg6[%c2_134, %c0_135] : memref<8x5xi32, #tpu.memory_space<vmem>>, vector<1x5xi32>
    %c0_i32_136 = arith.constant 0 : i32
    %482 = vector.broadcast %c0_i32_136 : i32 to vector<1x5xi32>
    %483 = arith.select %480, %481, %482 : vector<1x5xi1>, vector<1x5xi32>
    %cst_137 = arith.constant dense<0> : vector<1xi32>
    %484 = vector.multi_reduction <add>, %483, %cst_137 [1] : vector<1x5xi32> to vector<1xi32>
    %485 = vector.shape_cast %484 : vector<1xi32> to vector<1x1xi32>
    %c1_i32 = arith.constant 1 : i32
    %486 = vector.broadcast %c1_i32 : i32 to vector<1x8xi32>
    %487 = arith.cmpi eq, %412, %486 : vector<1x8xi32>
    %488 = vector.shape_cast %485 : vector<1x1xi32> to vector<1x1xi32>
    %489 = vector.broadcast %488 : vector<1x1xi32> to vector<1x8xi32>
    %490 = arith.select %487, %489, %478 : vector<1x8xi1>, vector<1x8xi32>
    %491 = vector.broadcast %485 : vector<1x1xi32> to vector<1x5xi32>
    %492 = arith.cmpi eq, %411, %491 : vector<1x5xi32>
    %c1_138 = arith.constant 1 : index
    %c0_139 = arith.constant 0 : index
    %493 = vector.load %arg6[%c1_138, %c0_139] : memref<8x5xi32, #tpu.memory_space<vmem>>, vector<1x5xi32>
    %c0_i32_140 = arith.constant 0 : i32
    %494 = vector.broadcast %c0_i32_140 : i32 to vector<1x5xi32>
    %495 = arith.select %492, %493, %494 : vector<1x5xi1>, vector<1x5xi32>
    %cst_141 = arith.constant dense<0> : vector<1xi32>
    %496 = vector.multi_reduction <add>, %495, %cst_141 [1] : vector<1x5xi32> to vector<1xi32>
    %497 = vector.shape_cast %496 : vector<1xi32> to vector<1x1xi32>
    %c0_i32_142 = arith.constant 0 : i32
    %498 = vector.broadcast %c0_i32_142 : i32 to vector<1x8xi32>
    %499 = arith.cmpi eq, %412, %498 : vector<1x8xi32>
    %500 = vector.shape_cast %497 : vector<1x1xi32> to vector<1x1xi32>
    %501 = vector.broadcast %500 : vector<1x1xi32> to vector<1x8xi32>
    %502 = arith.select %499, %501, %490 : vector<1x8xi1>, vector<1x8xi32>
    %c0_143 = arith.constant 0 : index
    %c0_144 = arith.constant 0 : index
    %503 = vector.load %arg3[%c0_143, %c0_144] : memref<1x8xi32, #tpu.memory_space<vmem>>, vector<1x8xi32>
    tpu.vector_store %arg3[%c0_143, %c0_144], %502 {strides = array<i32>} : memref<1x8xi32, #tpu.memory_space<vmem>>, vector<1x8xi32>,
    return
  }
}

</mosaic_0001>

<bundles_post_ra>
// kernel: forward.1
= control target key start
LH: loop header
LB: loop body
LE: loop exit
PB: predicated region body
PF: predicated region fallthrough
CT: control target
= control target key end

     0   :  { %10 = vsyncpa [#allocation5], 0  ;;  %v1655_v3 = vmov 0.0|0.0   ;;  %v1656_v4 = vmov 0.0   ;;  %vm1657_vm0 = vmmov 0   ;;  %vm38_vm1 = vcmask 130048   ;;  %s2059_s0 = inlined_call_operand.vmem [shape: f32[8,16], index: 0, kind: input, shape index: {}]   ;;  %s2060_s1 = inlined_call_operand.vmem [shape: f32[104,128], index: 1, kind: input, shape index: {}]   ;;  %s2061_s2 = inlined_call_operand.hbm [shape: f32[8,5], index: 2, kind: output, shape index: {0}]   ;;  %s2062_s3 = inlined_call_operand.hbm [shape: s32[1,8], index: 3, kind: output, shape index: {1}]   ;;  %s2063_s4 = inlined_call_operand.hbm [shape: f32[1,1], index: 4, kind: output, shape index: {2}]  }
   0x1   :  { %v17_v0 = vld [vmem:[%s2060_s1] sm:$0xff]  ;;  %v18_v1 = vld [vmem:[%s2060_s1 + $0x8] sm:$0xff]  ;;  %v19_v2 = vld [vmem:[%s2060_s1 + $0x10] sm:$0xff]  ;;  %1500 = vmatprep.subr.bf16.mxu0 %v1655_v3  ;;  %1425 = vmatprep.subr.bf16.mxu1 %v1656_v4 }
   0x2   :  { %v1501_v5 = vpack.c.bf16 %v18_v1, %v17_v0  ;;  %v20_v6 = vld [vmem:[%s2060_s1 + $0x18] sm:$0xff]  ;;  %v21_v7 = vld [vmem:[%s2060_s1 + $0x20] sm:$0xff]  ;;  %1422 = vmatprep.mubr.msk.f32.mxu0 %vm1657_vm0, %v1656_v4  ;;  %v22_v9 = vld [vmem:[%s2060_s1 + $0x28] sm:$0xff]  ;;  %1429 = vmatprep.mubr.msk.bf16.mxu1 %vm1657_vm0, %v1656_v4 }
   0x3   :  { %v1708_v8 = vpack.c.bf16 %v20_v6, %v19_v2  ;;  %v33_v10 = vld [vmem:[%s2059_s0] sm:$0xff] }
   0x4   :  { %1502 = vmatpush3.bf16.msra.mxu0 %v1501_v5 }
   0x5   :  { %11 = vsyncpa [#allocation7], 0  ;;  %1426 = vmatpush3.bf16.msra.mxu1 %v1708_v8  ;;  %v1721_v11 = vpack.c.bf16 %v22_v9, %v21_v7  ;;  %v1726_v12 = vld [vmem:[%s2060_s1 + $0x31] sm:$0x1]  ;;  %1433 = vmatprep.subr.bf16.mxu0 %v1656_v4  ;;  %vm136_vm2 = vcmask 261120   ;;  %v112_v14 = vlaneseq  ;;  %s1658_s6 = smov 32  }
   0x6   :  { %1427 = vmatprep.subr.bf16.mxu1 %v1656_v4  ;;  %v135_v13 = vpack.c.bf16 %v1726_v12, %v1726_v12  ;;  %v1365_v16 = vld [vmem:[%s2060_s1 + $0x30] ss:$0 sm:$0xff]  ;;  %s1659_s7 = smov 64   ;;  %s1663_s20 = smov [#allocation4]  }
   0x7   :  { %1423 = vmatmul.mubr.msk.f32.vlgmr.msra.gmra.mrb[0].mxu0 %vm38_vm1, %v33_v10  ;;  %v1748_v15 = vand.u32 127, %v112_v14  ;;  %vm211_vm1 = vcmask 254080   ;;  %s1330_s21 = sshll.u32 %s1663_s20, 4  ;;  %s1331_s21 = int_to_ptr.vmem [resolvable:$true] %s1330_s21 }
   0x8   :  { %1434 = vmatpush3.bf16.msra.mxu0 %v1708_v8  ;;  %1437 = vmatprep.mubr.msk.bf16.mxu0 %vm1657_vm0, %v1656_v4  ;;  %s1585_s22 = scalar_lea.vmem %s1331_s21, 128  ;;  %p1590_p1 = scmp.lt.s32.totalorder %s1331_s21, %s1331_s21 }
   0x9   :  { %1428 = vmatpush3.bf16.msra.mxu1 %v1721_v11  ;;  %1435 = vmatprep.subr.bf16.mxu0 %v1656_v4  ;;  %vm119_vm3 = vcmp.ge.s32.totalorder %v1748_v15, 32  ;;  %vm120_vm4 = vcmp.lt.s32.totalorder %v1748_v15, 48  ;;  %vm116_vm5 = vcmp.lt.s32.totalorder %v1748_v15, 16  ;;  %vm123_vm7 = vcmp.ge.s32.totalorder %v1748_v15, 64  ;;  %p1586_p0 = scmp.ne.s32.totalorder %s1331_s21, %s1585_s22  ;;  %p1591_p2 = scmp.lt.s32.totalorder %s1585_s22, %s1585_s22 }
   0xa   :  { %1441 = vmatprep.subr.bf16.mxu1 %v1656_v4  ;;  %vm121_vm6 = vmand %vm119_vm3, %vm120_vm4  ;;  %vm124_vm8 = vcmp.lt.s32.totalorder %v1748_v15, 80  ;;  %vm127_vm11 = vcmp.ge.s32.totalorder %v1748_v15, 96  ;;  %vm128_vm12 = vcmp.lt.s32.totalorder %v1748_v15, 112  ;;  %vm389_vm3 = vcmask 124930  }
   0xb   :  { %vm122_vm9 = vmor %vm116_vm5, %vm121_vm6  ;;  %vm391_vm4 = vcmask 256130   ;;  %vm298_vm5 = vcmask 123905   ;;  %vm300_vm6 = vcmask 255105   ;;  %p1592_p3 = por %p1591_p2, %p1590_p1 }
   0xc   :  { %1430 = vmatmul.mubr.msk.bf16.vlgmr.msra.gmra.mrb[0].mxu1 %vm136_vm2, %v135_v13  ;;  %1436 = vmatpush3.bf16.msra.mxu0 %v1721_v11  ;;  %vm125_vm10 = vmand %vm123_vm7, %vm124_vm8  ;;  %vm744_vm7 = vcmask 129030   ;;  %vm746_vm8 = vcmask 260230  }
   0xd   :  { %1442 = vmatpush3.bf16.msra.mxu1 %v1708_v8  ;;  %1445 = vmatprep.mubr.msk.bf16.mxu1 %vm1657_vm0, %v1656_v4  ;;  %vm126_vm13 = vmor %vm122_vm9, %vm125_vm10  ;;  %vm479_vm9 = vcmask 125955   ;;  %vm481_vm10 = vcmask 257155   ;;  %p1593_p4 = pnand %p1592_p3, %p1586_p0 }
   0xe   :  { %1443 = vmatprep.subr.bf16.mxu1 %v1656_v4  ;;  %1449 = vmatprep.subr.bf16.mxu0 %v1656_v4  ;;  %vm129_vm14 = vmand %vm127_vm11, %vm128_vm12  ;;  %vm568_vm11 = vcmask 126980   ;;  %vm570_vm12 = vcmask 258180  }
   0xf   :  { %vm130_vm15 = vmor %vm126_vm13, %vm129_vm14  ;;  %vm655_vm13 = vcmask 128005   ;;  %vm657_vm14 = vcmask 259205  }
  0x11   :  { %1444 = vmatpush3.bf16.msra.mxu1 %v1721_v11 }
  0x12   :  { %1457 = vmatprep.subr.bf16.mxu1 %v1656_v4 }
  0xda   :  { %v108_v17 = vpop.f32.mrb[0].mxu0 }
  0xdb   :  { %v109_v18 = vadd.f32 %v1365_v16, %v108_v17  ;;  %v1424_v19 = vpop.f32.mrb[1].mxu0 }
  0xdd   :  { %v132_v20 = vrot.slane %v109_v18, 7  ;;  %v213_v21 = vrot.slane %v109_v18, 5  ;;  %v302_v22 = vrot.slane %v109_v18, 3  ;;  %v393_v23 = vrot.slane %v109_v18, 1 }
  0xdf   :  { %v1760_v24 = vsel %vm130_vm15, %v109_v18, %v132_v20  ;;  %v174_v25 = vpop.f32.mrb[0].mxu1  ;;  %v1762_v26 = vsel %vm130_vm15, %v109_v18, %v213_v21  ;;  %v1764_v27 = vsel %vm130_vm15, %v109_v18, %v302_v22  ;;  %v1766_v28 = vsel %vm130_vm15, %v109_v18, %v393_v23 }
  0xe0   :  { %v180_v29 = vadd.f32 %v174_v25, %v1760_v24  ;;  %v1431_v30 = vpop.f32.mrb[1].mxu1  ;;  %vm831_vm15 = vcmask 130055  }
  0xe1   :  { %v177_v31 = vpop.f32.mrb[2].mxu1 }
  0xe2   :  { %1521 = vtanh.f32 %v180_v29  ;;  %v1432_v32 = vpop.f32.mrb[3].mxu1  ;;  %v1368_v34 = vmul.f32 -1.442695, %v180_v29 }
  0xe4   :  { %1523 = vpow2.f32 %v1368_v34 }
  0xec   :  { %v1522_v33 = vpop.eup %1521 }
  0xed   :  { %190 = vrot.lane.b32.xlu0 %v1522_v33, %s1658_s6 }
  0xee   :  { %v1524_v35 = vpop.eup %1523 }
  0xef   :  { %v184_v36 = vadd.f32 1.0, %v1524_v35 }
  0xf1   :  { %1525 = vrcp.f32 %v184_v36 }
  0xfb   :  { %v1526_v37 = vpop.eup %1525 }
  0xfc   :  { %v188_v40 = vmul.f32 %v1526_v37, %v1726_v12 }
 0x15f   :  { %v191_v38 = vpop.permute.xlu0 %190 }
 0x160   :  { %v193_v39 = vmul.f32 %v1526_v37, %v191_v38 }
 0x162   :  { %195 = vrot.lane.b32.xlu0 %v193_v39, %s1658_s6 }
 0x1d4   :  { %v196_v41 = vpop.permute.xlu0 %195 }
 0x1d5   :  { %v198_v42 = vadd.f32 %v196_v41, %v188_v40 }
 0x1d7   :  { %1527 = vtanh.f32 %v198_v42  ;;  %v275_v61 = vrot.slane %v198_v42, 7 }
 0x1e1   :  { %v1528_v43 = vpop.eup %1527 }
 0x1e2   :  { %201 = vrot.lane.b32.xlu1 %v1528_v43, %s1658_s6 }
 0x254   :  { %v202_v44 = vpop.permute.xlu1 %201 }
 0x255   :  { %v1773_v45 = vmul.f32 %v1526_v37, %v202_v44 }
 0x257   :  { %v216_v46 = vpack.c.bf16 %v1773_v45, %v1773_v45 }
 0x259   :  { %218 = vrot.lane.b32.xlu1 %v216_v46, %s1659_s7 }
 0x2cb   :  { %v219_v47 = vpop.permute.xlu1 %218 }
 0x2cc   :  { %1438 = vmatmul.mubr.msk.bf16.vlgmr.msra.gmra.mrb[4].mxu0 %vm136_vm2, %v219_v47 }
 0x2cd   :  { %1450 = vmatpush3.bf16.msra.mxu0 %v1708_v8  ;;  %1453 = vmatprep.mubr.msk.bf16.mxu0 %vm1657_vm0, %v1656_v4 }
 0x2ce   :  { %1451 = vmatprep.subr.bf16.mxu0 %v1656_v4 }
 0x2d1   :  { %1452 = vmatpush3.bf16.msra.mxu0 %v1721_v11 }
 0x2d2   :  { %1465 = vmatprep.subr.bf16.mxu0 %v1656_v4 }
 0x39f   :  { %v257_v48 = vpop.f32.mrb[4].mxu0 }
 0x3a0   :  { %v264_v49 = vrot.slane %v257_v48, 7  ;;  %v1439_v50 = vpop.f32.mrb[5].mxu0 }
 0x3a1   :  { %v260_v51 = vpop.f32.mrb[6].mxu0 }
 0x3a2   :  { %v266_v52 = vadd.f32 %v264_v49, %v1762_v26  ;;  %v1440_v53 = vpop.f32.mrb[7].mxu0 }
 0x3a4   :  { %1529 = vtanh.f32 %v266_v52  ;;  %v1370_v55 = vmul.f32 -1.442695, %v266_v52 }
 0x3a6   :  { %1531 = vpow2.f32 %v1370_v55 }
 0x3ae   :  { %v1530_v54 = vpop.eup %1529 }
 0x3af   :  { %279 = vrot.lane.b32.xlu0 %v1530_v54, %s1658_s6 }
 0x3b0   :  { %v1532_v56 = vpop.eup %1531 }
 0x3b1   :  { %v270_v57 = vadd.f32 1.0, %v1532_v56 }
 0x3b3   :  { %1533 = vrcp.f32 %v270_v57 }
 0x3bd   :  { %v1534_v58 = vpop.eup %1533 }
 0x3be   :  { %v277_v62 = vmul.f32 %v1534_v58, %v275_v61 }
 0x421   :  { %v280_v59 = vpop.permute.xlu0 %279 }
 0x422   :  { %v282_v60 = vmul.f32 %v1534_v58, %v280_v59 }
 0x424   :  { %284 = vrot.lane.b32.xlu1 %v282_v60, %s1658_s6 }
 0x496   :  { %v285_v63 = vpop.permute.xlu1 %284 }
 0x497   :  { %v287_v0 = vadd.f32 %v285_v63, %v277_v62 }
 0x499   :  { %1535 = vtanh.f32 %v287_v0  ;;  %v366_v30 = vrot.slane %v287_v0, 7 }
 0x4a3   :  { %v1536_v1 = vpop.eup %1535 }
 0x4a4   :  { %290 = vrot.lane.b32.xlu0 %v1536_v1, %s1658_s6 }
 0x516   :  { %v291_v2 = vpop.permute.xlu0 %290 }
 0x517   :  { %v1789_v5 = vmul.f32 %v1534_v58, %v291_v2 }
 0x519   :  { %v305_v6 = vpack.c.bf16 %v1789_v5, %v1789_v5 }
 0x51b   :  { %v307_v7 = vshrl.u32 %v305_v6, 16 }
 0x51d   :  { %309 = vrot.lane.b32.xlu1 %v307_v7, %s1659_s7 }
 0x58f   :  { %v310_v9 = vpop.permute.xlu1 %309 }
 0x590   :  { %1446 = vmatmul.mubr.msk.bf16.vlgmr.msra.gmra.mrb[4].mxu1 %vm136_vm2, %v310_v9 }
 0x591   :  { %1458 = vmatpush3.bf16.msra.mxu1 %v1708_v8  ;;  %1461 = vmatprep.mubr.msk.bf16.mxu1 %vm1657_vm0, %v1656_v4 }
 0x592   :  { %1459 = vmatprep.subr.bf16.mxu1 %v1656_v4 }
 0x595   :  { %1460 = vmatpush3.bf16.msra.mxu1 %v1721_v11 }
 0x596   :  { %1473 = vmatprep.subr.bf16.mxu1 %v1656_v4 }
 0x663   :  { %v348_v10 = vpop.f32.mrb[4].mxu1 }
 0x664   :  { %v355_v12 = vrot.slane %v348_v10, 6  ;;  %v1447_v13 = vpop.f32.mrb[5].mxu1 }
 0x665   :  { %v351_v16 = vpop.f32.mrb[6].mxu1 }
 0x666   :  { %v357_v17 = vadd.f32 %v355_v12, %v1764_v27  ;;  %v1448_v18 = vpop.f32.mrb[7].mxu1 }
 0x668   :  { %1537 = vtanh.f32 %v357_v17  ;;  %v1372_v20 = vmul.f32 -1.442695, %v357_v17 }
 0x66a   :  { %1539 = vpow2.f32 %v1372_v20 }
 0x672   :  { %v1538_v19 = vpop.eup %1537 }
 0x673   :  { %370 = vrot.lane.b32.xlu0 %v1538_v19, %s1658_s6 }
 0x674   :  { %v1540_v21 = vpop.eup %1539 }
 0x675   :  { %v361_v22 = vadd.f32 1.0, %v1540_v21 }
 0x677   :  { %1541 = vrcp.f32 %v361_v22 }
 0x681   :  { %v1542_v23 = vpop.eup %1541 }
 0x682   :  { %v368_v31 = vmul.f32 %v1542_v23, %v366_v30 }
 0x6e5   :  { %v371_v25 = vpop.permute.xlu0 %370 }
 0x6e6   :  { %v373_v29 = vmul.f32 %v1542_v23, %v371_v25 }
 0x6e8   :  { %375 = vrot.lane.b32.xlu1 %v373_v29, %s1658_s6 }
 0x75a   :  { %v376_v32 = vpop.permute.xlu1 %375 }
 0x75b   :  { %v378_v33 = vadd.f32 %v376_v32, %v368_v31 }
 0x75d   :  { %1543 = vtanh.f32 %v378_v33  ;;  %v456_v54 = vrot.slane %v378_v33, 7 }
 0x767   :  { %v1544_v34 = vpop.eup %1543 }
 0x768   :  { %381 = vrot.lane.b32.xlu0 %v1544_v34, %s1658_s6 }
 0x7da   :  { %v382_v35 = vpop.permute.xlu0 %381 }
 0x7db   :  { %v1805_v36 = vmul.f32 %v1542_v23, %v382_v35 }
 0x7dd   :  { %v396_v37 = vpack.c.bf16 %v1805_v36, %v1805_v36 }
 0x7df   :  { %v398_v38 = vrot.slane %v396_v37, 1 }
 0x7e1   :  { %399 = vrot.lane.b32.xlu1 %v398_v38, %s1659_s7 }
 0x853   :  { %v400_v39 = vpop.permute.xlu1 %399 }
 0x854   :  { %1454 = vmatmul.mubr.msk.bf16.vlgmr.msra.gmra.mrb[8].mxu0 %vm136_vm2, %v400_v39 }
 0x855   :  { %1466 = vmatpush3.bf16.msra.mxu0 %v1708_v8  ;;  %1469 = vmatprep.mubr.msk.bf16.mxu0 %vm1657_vm0, %v1656_v4 }
 0x856   :  { %1467 = vmatprep.subr.bf16.mxu0 %v1656_v4 }
 0x859   :  { %1468 = vmatpush3.bf16.msra.mxu0 %v1721_v11 }
 0x85a   :  { %1481 = vmatprep.subr.bf16.mxu0 %v1656_v4 }
 0x927   :  { %v438_v40 = vpop.f32.mrb[8].mxu0 }
 0x928   :  { %v445_v41 = vrot.slane %v438_v40, 5  ;;  %v1455_v42 = vpop.f32.mrb[9].mxu0 }
 0x929   :  { %v441_v43 = vpop.f32.mrb[10].mxu0 }
 0x92a   :  { %v447_v44 = vadd.f32 %v445_v41, %v1766_v28  ;;  %v1456_v46 = vpop.f32.mrb[11].mxu0 }
 0x92c   :  { %1545 = vtanh.f32 %v447_v44  ;;  %v1374_v48 = vmul.f32 -1.442695, %v447_v44 }
 0x92e   :  { %1547 = vpow2.f32 %v1374_v48 }
 0x936   :  { %v1546_v47 = vpop.eup %1545 }
 0x937   :  { %460 = vrot.lane.b32.xlu0 %v1546_v47, %s1658_s6 }
 0x938   :  { %v1548_v49 = vpop.eup %1547 }
 0x939   :  { %v451_v50 = vadd.f32 1.0, %v1548_v49 }
 0x93b   :  { %1549 = vrcp.f32 %v451_v50 }
 0x945   :  { %v1550_v51 = vpop.eup %1549 }
 0x946   :  { %v458_v55 = vmul.f32 %v1550_v51, %v456_v54 }
 0x9a9   :  { %v461_v52 = vpop.permute.xlu0 %460 }
 0x9aa   :  { %v463_v53 = vmul.f32 %v1550_v51, %v461_v52 }
 0x9ac   :  { %465 = vrot.lane.b32.xlu1 %v463_v53, %s1658_s6 }
 0xa1e   :  { %v466_v56 = vpop.permute.xlu1 %465 }
 0xa1f   :  { %v468_v57 = vadd.f32 %v466_v56, %v458_v55 }
 0xa21   :  { %1551 = vtanh.f32 %v468_v57  ;;  %v545_v21 = vrot.slane %v468_v57, 7 }
 0xa2b   :  { %v1552_v58 = vpop.eup %1551 }
 0xa2c   :  { %471 = vrot.lane.b32.xlu0 %v1552_v58, %s1658_s6 }
 0xa9e   :  { %v472_v59 = vpop.permute.xlu0 %471 }
 0xa9f   :  { %v1821_v60 = vmul.f32 %v1550_v51, %v472_v59 }
 0xaa1   :  { %v483_v61 = vpack.c.bf16 %v1821_v60, %v1821_v60 }
 0xaa3   :  { %v485_v62 = vshrl.u32 %v483_v61, 16 }
 0xaa5   :  { %v487_v63 = vrot.slane %v485_v62, 1 }
 0xaa7   :  { %488 = vrot.lane.b32.xlu1 %v487_v63, %s1659_s7 }
 0xb19   :  { %v489_v0 = vpop.permute.xlu1 %488 }
 0xb1a   :  { %1462 = vmatmul.mubr.msk.bf16.vlgmr.msra.gmra.mrb[8].mxu1 %vm136_vm2, %v489_v0 }
 0xb1b   :  { %1474 = vmatpush3.bf16.msra.mxu1 %v1708_v8  ;;  %1477 = vmatprep.mubr.msk.bf16.mxu1 %vm1657_vm0, %v1656_v4 }
 0xb1c   :  { %1475 = vmatprep.subr.bf16.mxu1 %v1656_v4 }
 0xb1f   :  { %1476 = vmatpush3.bf16.msra.mxu1 %v1721_v11 }
 0xb20   :  { %1503 = vmatprep.subr.bf16.mxu1 %v1655_v3 }
 0xbed   :  { %v527_v1 = vpop.f32.mrb[8].mxu1 }
 0xbee   :  { %v534_v2 = vrot.slane %v527_v1, 4  ;;  %v1463_v6 = vpop.f32.mrb[9].mxu1 }
 0xbef   :  { %v530_v7 = vpop.f32.mrb[10].mxu1 }
 0xbf0   :  { %v536_v9 = vadd.f32 %v534_v2, %v1760_v24  ;;  %v1464_v10 = vpop.f32.mrb[11].mxu1 }
 0xbf2   :  { %1553 = vtanh.f32 %v536_v9  ;;  %v1376_v13 = vmul.f32 -1.442695, %v536_v9 }
 0xbf4   :  { %1555 = vpow2.f32 %v1376_v13 }
 0xbfc   :  { %v1554_v12 = vpop.eup %1553 }
 0xbfd   :  { %549 = vrot.lane.b32.xlu0 %v1554_v12, %s1658_s6 }
 0xbfe   :  { %v1556_v16 = vpop.eup %1555 }
 0xbff   :  { %v540_v17 = vadd.f32 1.0, %v1556_v16 }
 0xc01   :  { %1557 = vrcp.f32 %v540_v17 }
 0xc0b   :  { %v1558_v18 = vpop.eup %1557 }
 0xc0c   :  { %v547_v22 = vmul.f32 %v1558_v18, %v545_v21 }
 0xc6f   :  { %v550_v19 = vpop.permute.xlu0 %549 }
 0xc70   :  { %v552_v20 = vmul.f32 %v1558_v18, %v550_v19 }
 0xc72   :  { %554 = vrot.lane.b32.xlu1 %v552_v20, %s1658_s6 }
 0xce4   :  { %v555_v23 = vpop.permute.xlu1 %554 }
 0xce5   :  { %v557_v25 = vadd.f32 %v555_v23, %v547_v22 }
 0xce7   :  { %1559 = vtanh.f32 %v557_v25 }
 0xcf1   :  { %v1560_v24 = vpop.eup %1559 }
 0xcf2   :  { %560 = vrot.lane.b32.xlu0 %v1560_v24, %s1658_s6 }
 0xd64   :  { %v561_v29 = vpop.permute.xlu0 %560 }
 0xd65   :  { %v1837_v30 = vmul.f32 %v1558_v18, %v561_v29 }
 0xd67   :  { %v572_v31 = vpack.c.bf16 %v1837_v30, %v1837_v30 }
 0xd69   :  { %v574_v32 = vrot.slane %v572_v31, 2 }
 0xd6b   :  { %575 = vrot.lane.b32.xlu1 %v574_v32, %s1659_s7 }
 0xddd   :  { %v576_v33 = vpop.permute.xlu1 %575 }
 0xdde   :  { %1470 = vmatmul.mubr.msk.bf16.vlgmr.msra.gmra.mrb[12].mxu0 %vm136_vm2, %v576_v33 }
 0xddf   :  { %1482 = vmatpush3.bf16.msra.mxu0 %v1708_v8  ;;  %1485 = vmatprep.mubr.msk.bf16.mxu0 %vm1657_vm0, %v1656_v4 }
 0xde0   :  { %1483 = vmatprep.subr.bf16.mxu0 %v1656_v4 }
 0xde3   :  { %1484 = vmatpush3.bf16.msra.mxu0 %v1721_v11  ;;  %v632_v11 = vrot.slane %v557_v25, 7 }
 0xeb1   :  { %v614_v34 = vpop.f32.mrb[12].mxu0 }
 0xeb2   :  { %v621_v35 = vrot.slane %v614_v34, 3  ;;  %v1471_v37 = vpop.f32.mrb[13].mxu0 }
 0xeb3   :  { %v617_v38 = vpop.f32.mrb[14].mxu0 }
 0xeb4   :  { %v623_v39 = vadd.f32 %v621_v35, %v1762_v26  ;;  %v1472_v40 = vpop.f32.mrb[15].mxu0 }
 0xeb6   :  { %1561 = vtanh.f32 %v623_v39  ;;  %v1378_v42 = vmul.f32 -1.442695, %v623_v39 }
 0xeb8   :  { %1563 = vpow2.f32 %v1378_v42 }
 0xec0   :  { %v1562_v41 = vpop.eup %1561 }
 0xec1   :  { %636 = vrot.lane.b32.xlu0 %v1562_v41, %s1658_s6 }
 0xec2   :  { %v1564_v8 = vpop.eup %1563 }
 0xec3   :  { %v627_v43 = vadd.f32 1.0, %v1564_v8 }
 0xec5   :  { %1565 = vrcp.f32 %v627_v43 }
 0xecf   :  { %v1566_v44 = vpop.eup %1565 }
 0xed0   :  { %v634_v48 = vmul.f32 %v1566_v44, %v632_v11 }
 0xf33   :  { %v637_v46 = vpop.permute.xlu0 %636 }
 0xf34   :  { %v639_v47 = vmul.f32 %v1566_v44, %v637_v46 }
 0xf36   :  { %641 = vrot.lane.b32.xlu1 %v639_v47, %s1658_s6  ;;  %v29_v47 = vld [vmem:[%s2060_s1 + $0x48] sm:$0xff] }
 0xfa8   :  { %v642_v49 = vpop.permute.xlu1 %641 }
 0xfa9   :  { %v644_v50 = vadd.f32 %v642_v49, %v634_v48 }
 0xfab   :  { %1567 = vtanh.f32 %v644_v50  ;;  %v721_v12 = vrot.slane %v644_v50, 7 }
 0xfb5   :  { %v1568_v26 = vpop.eup %1567 }
 0xfb6   :  { %647 = vrot.lane.b32.xlu0 %v1568_v26, %s1658_s6 }
0x1028   :  { %v648_v51 = vpop.permute.xlu0 %647 }
0x1029   :  { %v1852_v52 = vmul.f32 %v1566_v44, %v648_v51  ;;  %v28_v44 = vld [vmem:[%s2060_s1 + $0x40] sm:$0xff] }
0x102b   :  { %v659_v53 = vpack.c.bf16 %v1852_v52, %v1852_v52 }
0x102d   :  { %v661_v54 = vshrl.u32 %v659_v53, 16 }
0x102f   :  { %v663_v55 = vrot.slane %v661_v54, 2  ;;  %v1899_v54 = vshrl.u32 %v112_v14, 7 }
0x1031   :  { %664 = vrot.lane.b32.xlu1 %v663_v55, %s1659_s7  ;;  %v1905_v55 = vld [vmem:[%s2060_s1 + $0x60] sm:$0x1f] }
0x10a3   :  { %v665_v56 = vpop.permute.xlu1 %664 }
0x10a4   :  { %1478 = vmatmul.mubr.msk.bf16.vlgmr.msra.gmra.mrb[12].mxu1 %vm136_vm2, %v665_v56  ;;  %v1660_v56 = vmov -10000.0  }
0x10a5   :  { %1497 = vmatprep.mubr.msk.f32.mxu1 %vm1657_vm0, %v1656_v4  ;;  %vm209_vm0 = vcmask 122880  }
0x1177   :  { %v703_v57 = vpop.f32.mrb[12].mxu1 }
0x1178   :  { %v710_v58 = vrot.slane %v703_v57, 2  ;;  %v1479_v59 = vpop.f32.mrb[13].mxu1 }
0x1179   :  { %v706_v61 = vpop.f32.mrb[14].mxu1 }
0x117a   :  { %v712_v62 = vadd.f32 %v710_v58, %v1764_v27  ;;  %v1480_v63 = vpop.f32.mrb[15].mxu1 }
0x117c   :  { %1569 = vtanh.f32 %v712_v62  ;;  %v1380_v1 = vmul.f32 -1.442695, %v712_v62 }
0x117e   :  { %1571 = vpow2.f32 %v1380_v1 }
0x1186   :  { %v1570_v0 = vpop.eup %1569 }
0x1187   :  { %725 = vrot.lane.b32.xlu0 %v1570_v0, %s1658_s6 }
0x1188   :  { %v1572_v2 = vpop.eup %1571 }
0x1189   :  { %v716_v6 = vadd.f32 1.0, %v1572_v2  ;;  %v1383_v2 = vld [vmem:[%s2060_s1 + $0x58] ss:$0 sm:$0xff] }
0x118b   :  { %1573 = vrcp.f32 %v716_v6 }
0x1195   :  { %v1574_v7 = vpop.eup %1573 }
0x1196   :  { %v723_v13 = vmul.f32 %v1574_v7, %v721_v12 }
0x11f9   :  { %v726_v9 = vpop.permute.xlu0 %725 }
0x11fa   :  { %v728_v10 = vmul.f32 %v1574_v7, %v726_v9 }
0x11fc   :  { %730 = vrot.lane.b32.xlu1 %v728_v10, %s1658_s6  ;;  %v948_v10 = vsub.s32 0, %v1899_v54 }
0x126e   :  { %v731_v16 = vpop.permute.xlu1 %730 }
0x126f   :  { %v733_v17 = vadd.f32 %v731_v16, %v723_v13 }
0x1271   :  { %1575 = vtanh.f32 %v733_v17 }
0x127b   :  { %v1576_v27 = vpop.eup %1575 }
0x127c   :  { %736 = vrot.lane.b32.xlu0 %v1576_v27, %s1658_s6 }
0x12ee   :  { %v737_v18 = vpop.permute.xlu0 %736 }
0x12ef   :  { %v739_v19 = vmul.f32 %v1574_v7, %v737_v18 }
0x12f1   :  { %v748_v20 = vpack.c.bf16 %v739_v19, %v739_v19 }
0x12f3   :  { %v750_v21 = vrot.slane %v748_v20, 3 }
0x12f5   :  { %751 = vrot.lane.b32.xlu1 %v750_v21, %s1659_s7 }
0x1367   :  { %v752_v22 = vpop.permute.xlu1 %751 }
0x1368   :  { %1486 = vmatmul.mubr.msk.bf16.vlgmr.msra.gmra.mrb[16].mxu0 %vm136_vm2, %v752_v22 }
0x143b   :  { %v790_v23 = vpop.f32.mrb[16].mxu0 }
0x143c   :  { %v797_v25 = vrot.slane %v790_v23, 1  ;;  %v1487_v24 = vpop.f32.mrb[17].mxu0 }
0x143d   :  { %v793_v29 = vpop.f32.mrb[18].mxu0 }
0x143e   :  { %v799_v31 = vadd.f32 %v797_v25, %v1766_v28  ;;  %v1488_v32 = vpop.f32.mrb[19].mxu0  ;;  %v808_v28 = vrot.slane %v733_v17, 7 }
0x1440   :  { %1577 = vtanh.f32 %v799_v31  ;;  %v1382_v34 = vmul.f32 -1.442695, %v799_v31 }
0x1442   :  { %1579 = vpow2.f32 %v1382_v34 }
0x144a   :  { %v1578_v33 = vpop.eup %1577 }
0x144b   :  { %812 = vrot.lane.b32.xlu0 %v1578_v33, %s1658_s6 }
0x144c   :  { %v1580_v35 = vpop.eup %1579 }
0x144d   :  { %v803_v37 = vadd.f32 1.0, %v1580_v35 }
0x144f   :  { %1581 = vrcp.f32 %v803_v37 }
0x1459   :  { %v1582_v38 = vpop.eup %1581 }
0x145a   :  { %v810_v41 = vmul.f32 %v1582_v38, %v808_v28 }
0x14bd   :  { %v813_v39 = vpop.permute.xlu0 %812 }
0x14be   :  { %v815_v40 = vmul.f32 %v1582_v38, %v813_v39 }
0x14c0   :  { %817 = vrot.lane.b32.xlu1 %v815_v40, %s1658_s6 }
0x14c4   :  { %206 = vrot.lane.b32.xlu1 %v1773_v45, %s1659_s7 }
0x14c8   :  { %386 = vrot.lane.b32.xlu1 %v1805_v36, %s1659_s7 }
0x14cc   :  { %565 = vrot.lane.b32.xlu1 %v1837_v30, %s1659_s7  ;;  %v27_v30 = vld [vmem:[%s2060_s1 + $0x38] sm:$0xff] }
0x14cd   :  { %v1504_v46 = vpack.c.bf16 %v28_v44, %v27_v30 }
0x14cf   :  { %1505 = vmatpush3.bf16.msra.mxu1 %v1504_v46 }
0x14d0   :  { %741 = vrot.lane.b32.xlu1 %v739_v19, %s1659_s7  ;;  %1506 = vmatprep.subr.bf16.mxu1 %v1655_v3 }
0x1532   :  { %v818_v42 = vpop.permute.xlu1 %817 }
0x1533   :  { %v820_v8 = vadd.f32 %v818_v42, %v810_v41 }
0x1535   :  { %1583 = vtanh.f32 %v820_v8 }
0x1536   :  { %v207_v43 = vpop.permute.xlu1 %206 }
0x1537   :  { %210 = vst.msk [vmem:[#allocation2] sm:$0x1] %vm209_vm0, %v207_v43  ;;  %vm833_vm0 = vcmask 261255  }
0x1538   :  { %212 = vst.msk [vmem:[#allocation2 + $0x7] sm:$0x1] %vm211_vm1, %v207_v43  ;;  %vm920_vm1 = vcmp.eq.s32.totalorder %v1899_v54, 3 }
0x1539   :  { %v921_v57 = vsel %vm920_vm1, 0.0, %v1660_v56 }
0x153a   :  { %v387_v45 = vpop.permute.xlu1 %386  ;;  %v922_v58 = vadd.f32 %v921_v57, %v1905_v55 }
0x153b   :  { %390 = vst.msk [vmem:[#allocation2] sm:$0x4] %vm389_vm3, %v387_v45  ;;  %vm923_vm3 = vcmask 36864  }
0x153c   :  { %392 = vst.msk [vmem:[#allocation2 + $0x3] sm:$0x4] %vm391_vm4, %v387_v45  ;;  %v924_v59 = vsel %vm923_vm3, %v922_v58, -inf  ;;  %vm913_vm4 = vcmask 39936  }
0x153d   :  { %v925_v61 = vrot.slane %v924_v59, 4 }
0x153e   :  { %v566_v11 = vpop.permute.xlu1 %565 }
0x153f   :  { %v1584_v36 = vpop.eup %1583  ;;  %v926_v62 = vmax.f32 %v924_v59, %v925_v61 }
0x1540   :  { %823 = vrot.lane.b32.xlu0 %v1584_v36, %s1658_s6 }
0x1541   :  { %v927_v63 = vrot.slane %v926_v62, 2 }
0x1542   :  { %v742_v26 = vpop.permute.xlu1 %741 }
0x1543   :  { %v928_v0 = vmax.f32 %v926_v62, %v927_v63 }
0x1544   :  { %295 = vrot.lane.b32.xlu0 %v1789_v5, %s1659_s7  ;;  %v30_v5 = vld [vmem:[%s2060_s1 + $0x50] sm:$0xff]  ;;  %s1662_s1 = smov 124  }
0x1545   :  { %v929_v14 = vrot.slane %v928_v0, 1 }
0x1547   :  { %v930_v1 = vmax.f32 %v928_v0, %v929_v14 }
0x1548   :  { %476 = vrot.lane.b32.xlu0 %v1821_v60, %s1659_s7  ;;  %v1507_v60 = vpack.c.bf16 %v30_v5, %v29_v47 }
0x154a   :  { %1508 = vmatpush3.bf16.msra.mxu1 %v1507_v60  ;;  %v1008_v60 = vsub.s32 2, %v1899_v54 }
0x154c   :  { %652 = vrot.lane.b32.xlu0 %v1852_v52, %s1659_s7 }
0x15b2   :  { %v824_v48 = vpop.permute.xlu0 %823 }
0x15b3   :  { %v826_v49 = vmul.f32 %v1582_v38, %v824_v48 }
0x15b5   :  { %828 = vrot.lane.b32.xlu0 %v826_v49, %s1659_s7 }
0x15b6   :  { %v296_v50 = vpop.permute.xlu0 %295 }
0x15b7   :  { %299 = vst.msk [vmem:[#allocation2] sm:$0x2] %vm298_vm5, %v296_v50  ;;  %vm917_vm5 = vcmp.eq.s32.totalorder %v1899_v54, %v1748_v15 }
0x15b8   :  { %301 = vst.msk [vmem:[#allocation2 + $0x5] sm:$0x2] %vm300_vm6, %v296_v50  ;;  %v1920_v13 = vsel %vm917_vm5, 1.0, %v1656_v4  ;;  %v978_v4 = vsub.s32 1, %v1899_v54 }
0x15b9   :  { %745 = vst.msk [vmem:[#allocation2] sm:$0x40] %vm744_vm7, %v742_v26 }
0x15ba   :  { %747 = vst.msk [vmem:[#allocation2 - $0x5] sm:$0x40] %vm746_vm8, %v742_v26  ;;  %v477_v3 = vpop.permute.xlu0 %476 }
0x15bb   :  { %480 = vst.msk [vmem:[#allocation2] sm:$0x8] %vm479_vm9, %v477_v3 }
0x15bc   :  { %482 = vst.msk [vmem:[#allocation2 + $0x1] sm:$0x8] %vm481_vm10, %v477_v3 }
0x15bd   :  { %569 = vst.msk [vmem:[#allocation2] sm:$0x10] %vm568_vm11, %v566_v11 }
0x15be   :  { %571 = vst.msk [vmem:[#allocation2 - $0x1] sm:$0x10] %vm570_vm12, %v566_v11  ;;  %v653_v51 = vpop.permute.xlu0 %652 }
0x15bf   :  { %656 = vst.msk [vmem:[#allocation2] sm:$0x20] %vm655_vm13, %v653_v51 }
0x15c0   :  { %658 = vst.msk [vmem:[#allocation2 - $0x3] sm:$0x20] %vm657_vm14, %v653_v51 }
0x1627   :  { %v829_v52 = vpop.permute.xlu0 %828 }
0x1628   :  { %832 = vst.msk [vmem:[#allocation2] sm:$0x80] %vm831_vm15, %v829_v52 }
0x1629   :  { %834 = vst.msk [vmem:[#allocation2 - $0x7] sm:$0x80] %vm833_vm0, %v829_v52 }
0x1630   :  { %v835_v53 = vld [vmem:[#allocation2] sm:$0xff] }
0x1631   :  { %1498 = vmatmul.mubr.msk.f32.vlgmr.msra.gmra.mrb[16].mxu1 %vm136_vm2, %v835_v53  ;;  %vm943_vm2 = vcmask 32768  }
0x1704   :  { %v909_v6 = vpop.f32.mrb[16].mxu1 }
0x1705   :  { %v1912_v7 = vadd.f32 %v1383_v2, %v909_v6  ;;  %v1499_v9 = vpop.f32.mrb[17].mxu1 }
0x1706   :  { %v1038_v9 = vsub.s32 3, %v1899_v54 }
0x1707   :  { %v945_v12 = vadd.f32 %v930_v1, %v1912_v7  ;;  %914 = vst.msk [vmem:[#allocation4] sm:$0xff] %vm913_vm4, %v1912_v7 }
0x1709   :  { %v949_v16 = vrot.slane %v945_v12, %v948_v10 }
0x170b   :  { %v950_v17 = vmul.f32 %v1920_v13, %v949_v16 }
0x170d   :  { %v951_v27 = vsel %vm923_vm3, %v950_v17, 0.0 }
0x170e   :  { %952 = vadd.xlane.f32.xlu1 %v951_v27 }
0x179b   :  { %v953_v18 = vpop.xlane.xlu1 %952 }
0x179c   :  { %v954_v19 = vadd.f32 %v953_v18, %v1905_v55 }
0x179e   :  { %v955_v20 = vsel %vm923_vm3, %v954_v19, -inf }
0x179f   :  { %v956_v21 = vrot.slane %v955_v20, 4 }
0x17a1   :  { %v957_v22 = vmax.f32 %v955_v20, %v956_v21 }
0x17a3   :  { %v958_v23 = vrot.slane %v957_v22, 2 }
0x17a5   :  { %v959_v25 = vmax.f32 %v957_v22, %v958_v23 }
0x17a7   :  { %v960_v24 = vrot.slane %v959_v25, 1 }
0x17a9   :  { %v961_v29 = vmax.f32 %v959_v25, %v960_v24 }
0x17ab   :  { %vm962_vm6 = vcmp.eq.f32.partialorder %v954_v19, %v961_v29  ;;  %v975_v31 = vadd.f32 %v961_v29, %v1912_v7 }
0x17ac   :  { %v963_v32 = vsel %vm962_vm6, %v1899_v54, 5 }
0x17ad   :  { %v964_v33 = vsel %vm923_vm3, %v963_v32, 2147483647  ;;  %v979_v34 = vrot.slane %v975_v31, %v978_v4 }
0x17ae   :  { %v965_v35 = vrot.slane %v964_v33, 4 }
0x17af   :  { %v980_v37 = vmul.f32 %v1920_v13, %v979_v34 }
0x17b0   :  { %vm966_vm7 = vcmp.lt.s32.totalorder %v964_v33, %v965_v35 }
0x17b1   :  { %v967_v38 = vsel %vm966_vm7, %v964_v33, %v965_v35  ;;  %v981_v39 = vsel %vm923_vm3, %v980_v37, 0.0 }
0x17b2   :  { %v968_v40 = vrot.slane %v967_v38, 2  ;;  %982 = vadd.xlane.f32.xlu0 %v981_v39 }
0x17b4   :  { %vm969_vm8 = vcmp.lt.s32.totalorder %v967_v38, %v968_v40 }
0x17b5   :  { %v970_v28 = vsel %vm969_vm8, %v967_v38, %v968_v40  ;;  %v1068_v38 = vsub.s32 4, %v1899_v54 }
0x17b6   :  { %v971_v41 = vrot.slane %v970_v28, 1 }
0x17b8   :  { %vm972_vm9 = vcmp.lt.s32.totalorder %v970_v28, %v971_v41 }
0x17b9   :  { %v973_v42 = vsel %vm972_vm9, %v970_v28, %v971_v41 }
0x17ba   :  { %974 = vst.msk [vmem:[#allocation3 + $0x1] sm:$0x1] %vm943_vm2, %v973_v42 }
0x183f   :  { %v983_v8 = vpop.xlane.xlu0 %982 }
0x1840   :  { %v984_v43 = vadd.f32 %v983_v8, %v1905_v55 }
0x1842   :  { %v985_v45 = vsel %vm923_vm3, %v984_v43, -inf }
0x1843   :  { %v986_v36 = vrot.slane %v985_v45, 4 }
0x1845   :  { %v987_v30 = vmax.f32 %v985_v45, %v986_v36 }
0x1847   :  { %v988_v44 = vrot.slane %v987_v30, 2 }
0x1849   :  { %v989_v46 = vmax.f32 %v987_v30, %v988_v44 }
0x184b   :  { %v990_v47 = vrot.slane %v989_v46, 1 }
0x184d   :  { %v991_v5 = vmax.f32 %v989_v46, %v990_v47 }
0x184f   :  { %vm992_vm10 = vcmp.eq.f32.partialorder %v984_v43, %v991_v5  ;;  %v1005_v11 = vadd.f32 %v991_v5, %v1912_v7 }
0x1850   :  { %v993_v48 = vsel %vm992_vm10, %v1899_v54, 5 }
0x1851   :  { %v994_v49 = vsel %vm923_vm3, %v993_v48, 2147483647  ;;  %v1009_v50 = vrot.slane %v1005_v11, %v1008_v60 }
0x1852   :  { %v995_v26 = vrot.slane %v994_v49, 4 }
0x1853   :  { %v1010_v3 = vmul.f32 %v1920_v13, %v1009_v50 }
0x1854   :  { %vm996_vm11 = vcmp.lt.s32.totalorder %v994_v49, %v995_v26 }
0x1855   :  { %v997_v51 = vsel %vm996_vm11, %v994_v49, %v995_v26  ;;  %v1011_v52 = vsel %vm923_vm3, %v1010_v3, 0.0 }
0x1856   :  { %v998_v53 = vrot.slane %v997_v51, 2  ;;  %1012 = vadd.xlane.f32.xlu0 %v1011_v52 }
0x1858   :  { %vm999_vm12 = vcmp.lt.s32.totalorder %v997_v51, %v998_v53 }
0x1859   :  { %v1000_v56 = vsel %vm999_vm12, %v997_v51, %v998_v53  ;;  %v1098_v51 = vsub.s32 5, %v1899_v54 }
0x185a   :  { %v1001_v57 = vrot.slane %v1000_v56, 1 }
0x185c   :  { %vm1002_vm13 = vcmp.lt.s32.totalorder %v1000_v56, %v1001_v57 }
0x185d   :  { %v1003_v58 = vsel %vm1002_vm13, %v1000_v56, %v1001_v57 }
0x185e   :  { %1004 = vst.msk [vmem:[#allocation3 + $0x2] sm:$0x1] %vm943_vm2, %v1003_v58 }
0x18e3   :  { %v1013_v59 = vpop.xlane.xlu0 %1012 }
0x18e4   :  { %v1014_v61 = vadd.f32 %v1013_v59, %v1905_v55 }
0x18e6   :  { %v1015_v62 = vsel %vm923_vm3, %v1014_v61, -inf }
0x18e7   :  { %v1016_v63 = vrot.slane %v1015_v62, 4 }
0x18e9   :  { %v1017_v0 = vmax.f32 %v1015_v62, %v1016_v63 }
0x18eb   :  { %v1018_v14 = vrot.slane %v1017_v0, 2 }
0x18ed   :  { %v1019_v1 = vmax.f32 %v1017_v0, %v1018_v14 }
0x18ef   :  { %v1020_v2 = vrot.slane %v1019_v1, 1 }
0x18f1   :  { %v1021_v6 = vmax.f32 %v1019_v1, %v1020_v2 }
0x18f3   :  { %vm1022_vm14 = vcmp.eq.f32.partialorder %v1014_v61, %v1021_v6  ;;  %v1035_v10 = vadd.f32 %v1021_v6, %v1912_v7 }
0x18f4   :  { %v1023_v12 = vsel %vm1022_vm14, %v1899_v54, 5 }
0x18f5   :  { %v1024_v16 = vsel %vm923_vm3, %v1023_v12, 2147483647  ;;  %v1039_v17 = vrot.slane %v1035_v10, %v1038_v9 }
0x18f6   :  { %v1025_v27 = vrot.slane %v1024_v16, 4 }
0x18f7   :  { %v1040_v18 = vmul.f32 %v1920_v13, %v1039_v17 }
0x18f8   :  { %vm1026_vm15 = vcmp.lt.s32.totalorder %v1024_v16, %v1025_v27 }
0x18f9   :  { %v1027_v19 = vsel %vm1026_vm15, %v1024_v16, %v1025_v27  ;;  %v1041_v20 = vsel %vm923_vm3, %v1040_v18, 0.0 }
0x18fa   :  { %v1028_v21 = vrot.slane %v1027_v19, 2  ;;  %1042 = vadd.xlane.f32.xlu1 %v1041_v20 }
0x18fc   :  { %vm1029_vm0 = vcmp.lt.s32.totalorder %v1027_v19, %v1028_v21 }
0x18fd   :  { %v1030_v22 = vsel %vm1029_vm0, %v1027_v19, %v1028_v21  ;;  %v1128_v19 = vsub.s32 6, %v1899_v54 }
0x18fe   :  { %v1031_v23 = vrot.slane %v1030_v22, 1 }
0x1900   :  { %vm1032_vm1 = vcmp.lt.s32.totalorder %v1030_v22, %v1031_v23 }
0x1901   :  { %v1033_v25 = vsel %vm1032_vm1, %v1030_v22, %v1031_v23 }
0x1902   :  { %1034 = vst.msk [vmem:[#allocation3 + $0x3] sm:$0x1] %vm943_vm2, %v1033_v25 }
0x1987   :  { %v1043_v24 = vpop.xlane.xlu1 %1042 }
0x1988   :  { %v1044_v29 = vadd.f32 %v1043_v24, %v1905_v55 }
0x198a   :  { %v1045_v4 = vsel %vm923_vm3, %v1044_v29, -inf }
0x198b   :  { %v1046_v31 = vrot.slane %v1045_v4, 4 }
0x198d   :  { %v1047_v32 = vmax.f32 %v1045_v4, %v1046_v31 }
0x198f   :  { %v1048_v33 = vrot.slane %v1047_v32, 2 }
0x1991   :  { %v1049_v34 = vmax.f32 %v1047_v32, %v1048_v33 }
0x1993   :  { %v1050_v35 = vrot.slane %v1049_v34, 1 }
0x1995   :  { %v1051_v37 = vmax.f32 %v1049_v34, %v1050_v35 }
0x1997   :  { %vm1052_vm4 = vcmp.eq.f32.partialorder %v1044_v29, %v1051_v37  ;;  %v1065_v39 = vadd.f32 %v1051_v37, %v1912_v7 }
0x1998   :  { %v1053_v40 = vsel %vm1052_vm4, %v1899_v54, 5 }
0x1999   :  { %v1054_v28 = vsel %vm923_vm3, %v1053_v40, 2147483647  ;;  %v1069_v41 = vrot.slane %v1065_v39, %v1068_v38 }
0x199a   :  { %v1055_v42 = vrot.slane %v1054_v28, 4 }
0x199b   :  { %v1070_v8 = vmul.f32 %v1920_v13, %v1069_v41 }
0x199c   :  { %vm1056_vm5 = vcmp.lt.s32.totalorder %v1054_v28, %v1055_v42 }
0x199d   :  { %v1057_v43 = vsel %vm1056_vm5, %v1054_v28, %v1055_v42  ;;  %v1071_v45 = vsel %vm923_vm3, %v1070_v8, 0.0 }
0x199e   :  { %v1058_v36 = vrot.slane %v1057_v43, 2  ;;  %1072 = vadd.xlane.f32.xlu0 %v1071_v45 }
0x19a0   :  { %vm1059_vm6 = vcmp.lt.s32.totalorder %v1057_v43, %v1058_v36 }
0x19a1   :  { %v1060_v30 = vsel %vm1059_vm6, %v1057_v43, %v1058_v36  ;;  %v1158_v43 = vsub.s32 7, %v1899_v54  ;;  %vm1165_vm6 = vcmask 36896  }
0x19a2   :  { %v1061_v44 = vrot.slane %v1060_v30, 1 }
0x19a4   :  { %vm1062_vm7 = vcmp.lt.s32.totalorder %v1060_v30, %v1061_v44 }
0x19a5   :  { %v1063_v46 = vsel %vm1062_vm7, %v1060_v30, %v1061_v44 }
0x19a6   :  { %1064 = vst.msk [vmem:[#allocation3 + $0x4] sm:$0x1] %vm943_vm2, %v1063_v46 }
0x1a2b   :  { %v1073_v47 = vpop.xlane.xlu0 %1072 }
0x1a2c   :  { %v1074_v5 = vadd.f32 %v1073_v47, %v1905_v55 }
0x1a2e   :  { %v1075_v60 = vsel %vm923_vm3, %v1074_v5, -inf }
0x1a2f   :  { %v1076_v11 = vrot.slane %v1075_v60, 4 }
0x1a31   :  { %v1077_v48 = vmax.f32 %v1075_v60, %v1076_v11 }
0x1a33   :  { %v1078_v49 = vrot.slane %v1077_v48, 2 }
0x1a35   :  { %v1079_v50 = vmax.f32 %v1077_v48, %v1078_v49 }
0x1a37   :  { %v1080_v26 = vrot.slane %v1079_v50, 1 }
0x1a39   :  { %v1081_v3 = vmax.f32 %v1079_v50, %v1080_v26 }
0x1a3b   :  { %vm1082_vm8 = vcmp.eq.f32.partialorder %v1074_v5, %v1081_v3  ;;  %v1095_v52 = vadd.f32 %v1081_v3, %v1912_v7 }
0x1a3c   :  { %v1083_v53 = vsel %vm1082_vm8, %v1899_v54, 5 }
0x1a3d   :  { %v1084_v56 = vsel %vm923_vm3, %v1083_v53, 2147483647  ;;  %v1099_v57 = vrot.slane %v1095_v52, %v1098_v51 }
0x1a3e   :  { %v1085_v58 = vrot.slane %v1084_v56, 4 }
0x1a3f   :  { %v1100_v59 = vmul.f32 %v1920_v13, %v1099_v57 }
0x1a40   :  { %vm1086_vm9 = vcmp.lt.s32.totalorder %v1084_v56, %v1085_v58 }
0x1a41   :  { %v1087_v61 = vsel %vm1086_vm9, %v1084_v56, %v1085_v58  ;;  %v1101_v62 = vsel %vm923_vm3, %v1100_v59, 0.0 }
0x1a42   :  { %v1088_v63 = vrot.slane %v1087_v61, 2  ;;  %1102 = vadd.xlane.f32.xlu1 %v1101_v62 }
0x1a44   :  { %vm1089_vm10 = vcmp.lt.s32.totalorder %v1087_v61, %v1088_v63 }
0x1a45   :  { %v1090_v0 = vsel %vm1089_vm10, %v1087_v61, %v1088_v63 }
0x1a46   :  { %v1091_v14 = vrot.slane %v1090_v0, 1 }
0x1a48   :  { %vm1092_vm11 = vcmp.lt.s32.totalorder %v1090_v0, %v1091_v14 }
0x1a49   :  { %v1093_v1 = vsel %vm1092_vm11, %v1090_v0, %v1091_v14 }
0x1a4a   :  { %1094 = vst.msk [vmem:[#allocation3 + $0x5] sm:$0x1] %vm943_vm2, %v1093_v1 }
0x1acf   :  { %v1103_v2 = vpop.xlane.xlu1 %1102 }
0x1ad0   :  { %v1104_v6 = vadd.f32 %v1103_v2, %v1905_v55 }
0x1ad2   :  { %v1105_v9 = vsel %vm923_vm3, %v1104_v6, -inf }
0x1ad3   :  { %v1106_v10 = vrot.slane %v1105_v9, 4 }
0x1ad5   :  { %v1107_v12 = vmax.f32 %v1105_v9, %v1106_v10 }
0x1ad7   :  { %v1108_v16 = vrot.slane %v1107_v12, 2 }
0x1ad9   :  { %v1109_v17 = vmax.f32 %v1107_v12, %v1108_v16 }
0x1adb   :  { %v1110_v27 = vrot.slane %v1109_v17, 1 }
0x1add   :  { %v1111_v18 = vmax.f32 %v1109_v17, %v1110_v27 }
0x1adf   :  { %vm1112_vm12 = vcmp.eq.f32.partialorder %v1104_v6, %v1111_v18  ;;  %v1125_v20 = vadd.f32 %v1111_v18, %v1912_v7 }
0x1ae0   :  { %v1113_v21 = vsel %vm1112_vm12, %v1899_v54, 5  ;;  %vm1191_vm12 = vcmp.eq.s32.totalorder %v1748_v15, 7 }
0x1ae1   :  { %v1114_v22 = vsel %vm923_vm3, %v1113_v21, 2147483647  ;;  %v1129_v23 = vrot.slane %v1125_v20, %v1128_v19 }
0x1ae2   :  { %v1115_v25 = vrot.slane %v1114_v22, 4 }
0x1ae3   :  { %v1130_v24 = vmul.f32 %v1920_v13, %v1129_v23 }
0x1ae4   :  { %vm1116_vm13 = vcmp.lt.s32.totalorder %v1114_v22, %v1115_v25 }
0x1ae5   :  { %v1117_v29 = vsel %vm1116_vm13, %v1114_v22, %v1115_v25  ;;  %v1131_v4 = vsel %vm923_vm3, %v1130_v24, 0.0  ;;  %vm1212_vm13 = vcmp.eq.s32.totalorder %v1748_v15, 6 }
0x1ae6   :  { %v1118_v31 = vrot.slane %v1117_v29, 2  ;;  %1132 = vadd.xlane.f32.xlu0 %v1131_v4 }
0x1ae8   :  { %vm1119_vm14 = vcmp.lt.s32.totalorder %v1117_v29, %v1118_v31 }
0x1ae9   :  { %v1120_v32 = vsel %vm1119_vm14, %v1117_v29, %v1118_v31  ;;  %vm1230_vm14 = vcmp.eq.s32.totalorder %v1748_v15, 5 }
0x1aea   :  { %v1121_v33 = vrot.slane %v1120_v32, 1 }
0x1aec   :  { %vm1122_vm15 = vcmp.lt.s32.totalorder %v1120_v32, %v1121_v33 }
0x1aed   :  { %v1123_v34 = vsel %vm1122_vm15, %v1120_v32, %v1121_v33 }
0x1aee   :  { %1124 = vst.msk [vmem:[#allocation3 + $0x6] sm:$0x1] %vm943_vm2, %v1123_v34 }
0x1af5   :  { %v1215_v23 = vld [vmem:[#allocation3 + $0x6] sm:$0x1] }
0x1b73   :  { %v1133_v35 = vpop.xlane.xlu0 %1132 }
0x1b74   :  { %v1134_v37 = vadd.f32 %v1133_v35, %v1905_v55 }
0x1b76   :  { %v1135_v38 = vsel %vm923_vm3, %v1134_v37, -inf }
0x1b77   :  { %v1136_v39 = vrot.slane %v1135_v38, 4 }
0x1b79   :  { %v1137_v40 = vmax.f32 %v1135_v38, %v1136_v39 }
0x1b7b   :  { %v1138_v28 = vrot.slane %v1137_v40, 2 }
0x1b7d   :  { %v1139_v41 = vmax.f32 %v1137_v40, %v1138_v28 }
0x1b7f   :  { %v1140_v42 = vrot.slane %v1139_v41, 1 }
0x1b81   :  { %v1141_v8 = vmax.f32 %v1139_v41, %v1140_v42  ;;  %v1233_v42 = vld [vmem:[#allocation3 + $0x5] sm:$0x1] }
0x1b83   :  { %vm1142_vm0 = vcmp.eq.f32.partialorder %v1134_v37, %v1141_v8  ;;  %v1155_v45 = vadd.f32 %v1141_v8, %v1912_v7  ;;  %v1661_v7 = vmov 4  }
0x1b84   :  { %v1143_v36 = vsel %vm1142_vm0, %v1899_v54, 5  ;;  %1520 = vset.pattern.permute.xlu0 %v1661_v7  ;;  %vm1248_vm0 = vcmp.eq.s32.totalorder %v1748_v15, 4 }
0x1b85   :  { %v1144_v30 = vsel %vm923_vm3, %v1143_v36, 2147483647  ;;  %v1159_v44 = vrot.slane %v1155_v45, %v1158_v43 }
0x1b86   :  { %v1145_v46 = vrot.slane %v1144_v30, 4 }
0x1b87   :  { %v1160_v47 = vmul.f32 %v1920_v13, %v1159_v44 }
0x1b88   :  { %vm1146_vm1 = vcmp.lt.s32.totalorder %v1144_v30, %v1145_v46 }
0x1b89   :  { %v1147_v5 = vsel %vm1146_vm1, %v1144_v30, %v1145_v46  ;;  %v1161_v60 = vsel %vm923_vm3, %v1160_v47, 0.0 }
0x1b8a   :  { %v1148_v11 = vrot.slane %v1147_v5, 2  ;;  %1162 = vadd.xlane.f32.xlu1 %v1161_v60 }
0x1b8c   :  { %vm1149_vm4 = vcmp.lt.s32.totalorder %v1147_v5, %v1148_v11 }
0x1b8d   :  { %v1150_v48 = vsel %vm1149_vm4, %v1147_v5, %v1148_v11  ;;  %vm1266_vm4 = vcmp.eq.s32.totalorder %v1748_v15, 3 }
0x1b8e   :  { %v1151_v49 = vrot.slane %v1150_v48, 1 }
0x1b90   :  { %vm1152_vm5 = vcmp.lt.s32.totalorder %v1150_v48, %v1151_v49 }
0x1b91   :  { %v1153_v50 = vsel %vm1152_vm5, %v1150_v48, %v1151_v49 }
0x1b92   :  { %1154 = vst.msk [vmem:[#allocation3 + $0x7] sm:$0x1] %vm943_vm2, %v1153_v50  ;;  %v1251_v50 = vld [vmem:[#allocation3 + $0x4] sm:$0x1] }
0x1b99   :  { %v1197_v6 = vld [vmem:[#allocation3 + $0x7] sm:$0x1] }
0x1c17   :  { %v1163_v26 = vpop.xlane.xlu1 %1162 }
0x1c18   :  { %v1164_v3 = vadd.f32 %v1163_v26, %v1905_v55 }
0x1c1a   :  { %v1166_v13 = vsel %vm1165_vm6, %v1164_v3, -inf }
0x1c1b   :  { %v1167_v51 = vrot.slane %v1166_v13, 4 }
0x1c1d   :  { %v1168_v52 = vmax.f32 %v1166_v13, %v1167_v51 }
0x1c1f   :  { %v1169_v53 = vrot.slane %v1168_v52, 2 }
0x1c21   :  { %v1170_v56 = vmax.f32 %v1168_v52, %v1169_v53 }
0x1c23   :  { %v1171_v57 = vrot.slane %v1170_v56, 1 }
0x1c25   :  { %v1988_v58 = vmax.f32 %v1170_v56, %v1171_v57 }
0x1c27   :  { %vm1173_vm3 = vcmp.eq.f32.partialorder %v1164_v3, %v1988_v58 }
0x1c28   :  { %v1174_v59 = vsel %vm1173_vm3, %v1899_v54, 5 }
0x1c29   :  { %v1175_v61 = vsel %vm1165_vm6, %v1174_v59, 2147483647  ;;  %vm1284_vm6 = vcmp.eq.s32.totalorder %v1748_v15, 2 }
0x1c2a   :  { %v1176_v62 = vrot.slane %v1175_v61, 4 }
0x1c2c   :  { %vm1177_vm7 = vcmp.lt.s32.totalorder %v1175_v61, %v1176_v62 }
0x1c2d   :  { %v1178_v63 = vsel %vm1177_vm7, %v1175_v61, %v1176_v62  ;;  %vm1302_vm7 = vcmp.eq.s32.totalorder %v1748_v15, 1 }
0x1c2e   :  { %v1179_v0 = vrot.slane %v1178_v63, 2 }
0x1c30   :  { %vm1180_vm8 = vcmp.lt.s32.totalorder %v1178_v63, %v1179_v0 }
0x1c31   :  { %v1181_v14 = vsel %vm1180_vm8, %v1178_v63, %v1179_v0  ;;  %v1269_v0 = vld [vmem:[#allocation3 + $0x3] sm:$0x1] }
0x1c32   :  { %v1182_v55 = vrot.slane %v1181_v14, 1 }
0x1c34   :  { %vm1183_vm9 = vcmp.lt.s32.totalorder %v1181_v14, %v1182_v55 }
0x1c35   :  { %v1184_v1 = vsel %vm1183_vm9, %v1181_v14, %v1182_v55 }
0x1c36   :  { %1193 = vperm.xlu0 %1520, %v1184_v1  }
0x1cb5   :  { %v1194_v2 = vpop.permute.xlu0 %1193 }
0x1cb6   :  { %vm1196_vm10 = vcmp.eq.s32.totalorder %v1748_v15, %v1194_v2  ;;  %v1195_v39 = vsel %vm1191_vm12, %v1194_v2, 0 }
0x1cb7   :  { %v1198_v9 = vsel %vm1196_vm10, %v1197_v6, 0 }
0x1cb8   :  { %v1199_v10 = vsel %vm943_vm2, %v1198_v9, 0 }
0x1cb9   :  { %v1201_v12 = vshrl.u32 %v1199_v10, 16  ;;  %v1200_v16 = vand.u32 65535, %v1199_v10 }
0x1cbb   :  { %v1203_v54 = vcvt.s32.f32 %v1201_v12  ;;  %v1202_v17 = vcvt.s32.f32 %v1200_v16 }
0x1cbd   :  { %1206 = vadd.xlane.f32.xlu1 %v1203_v54 }
0x1cc1   :  { %1204 = vadd.xlane.f32.xlu1 %v1202_v17 }
0x1d4a   :  { %v1207_v27 = vpop.xlane.xlu1 %1206 }
0x1d4b   :  { %v1209_v18 = vcvt.f32.s32 %v1207_v27 }
0x1d4d   :  { %v1210_v20 = vshll.u32 %v1209_v18, 16 }
0x1d4e   :  { %v1205_v19 = vpop.xlane.xlu1 %1204 }
0x1d4f   :  { %v1208_v21 = vcvt.f32.s32 %v1205_v19  ;;  %v1287_v19 = vld [vmem:[#allocation3 + $0x2] sm:$0x1] }
0x1d51   :  { %v1211_v22 = vadd.s32 %v1210_v20, %v1208_v21 }
0x1d53   :  { %vm1214_vm11 = vcmp.eq.s32.totalorder %v1748_v15, %v1211_v22  ;;  %v1213_v28 = vsel %vm1212_vm13, %v1211_v22, %v1195_v39 }
0x1d54   :  { %v1216_v25 = vsel %vm1214_vm11, %v1215_v23, 0 }
0x1d55   :  { %v1217_v24 = vsel %vm943_vm2, %v1216_v25, 0 }
0x1d56   :  { %v1219_v29 = vshrl.u32 %v1217_v24, 16  ;;  %v1218_v31 = vand.u32 65535, %v1217_v24 }
0x1d58   :  { %v1221_v4 = vcvt.s32.f32 %v1219_v29  ;;  %v1220_v32 = vcvt.s32.f32 %v1218_v31 }
0x1d5a   :  { %1224 = vadd.xlane.f32.xlu1 %v1221_v4 }
0x1d5e   :  { %1222 = vadd.xlane.f32.xlu1 %v1220_v32 }
0x1de7   :  { %v1225_v33 = vpop.xlane.xlu1 %1224 }
0x1de8   :  { %v1227_v34 = vcvt.f32.s32 %v1225_v33 }
0x1dea   :  { %v1228_v37 = vshll.u32 %v1227_v34, 16 }
0x1deb   :  { %v1223_v35 = vpop.xlane.xlu1 %1222 }
0x1dec   :  { %v1226_v38 = vcvt.f32.s32 %v1223_v35  ;;  %v1305_v35 = vld [vmem:[#allocation3 + $0x1] sm:$0x1] }
0x1dee   :  { %v1229_v40 = vadd.s32 %v1228_v37, %v1226_v38 }
0x1df0   :  { %v1231_v41 = vsel %vm1230_vm14, %v1229_v40, %v1213_v28  ;;  %vm1232_vm15 = vcmp.eq.s32.totalorder %v1748_v15, %v1229_v40 }
0x1df1   :  { %v1234_v8 = vsel %vm1232_vm15, %v1233_v42, 0 }
0x1df2   :  { %v1235_v43 = vsel %vm943_vm2, %v1234_v8, 0 }
0x1df3   :  { %v1237_v45 = vshrl.u32 %v1235_v43, 16  ;;  %v1236_v30 = vand.u32 65535, %v1235_v43 }
0x1df5   :  { %v1239_v36 = vcvt.s32.f32 %v1237_v45  ;;  %v1238_v44 = vcvt.s32.f32 %v1236_v30 }
0x1df7   :  { %1242 = vadd.xlane.f32.xlu1 %v1239_v36 }
0x1dfb   :  { %1240 = vadd.xlane.f32.xlu1 %v1238_v44 }
0x1e84   :  { %v1243_v46 = vpop.xlane.xlu1 %1242 }
0x1e85   :  { %v1245_v47 = vcvt.f32.s32 %v1243_v46 }
0x1e87   :  { %v1246_v60 = vshll.u32 %v1245_v47, 16 }
0x1e88   :  { %v1241_v5 = vpop.xlane.xlu1 %1240 }
0x1e89   :  { %v1244_v11 = vcvt.f32.s32 %v1241_v5 }
0x1e8b   :  { %v1247_v48 = vadd.s32 %v1246_v60, %v1244_v11 }
0x1e8d   :  { %v1249_v49 = vsel %vm1248_vm0, %v1247_v48, %v1231_v41  ;;  %vm1250_vm1 = vcmp.eq.s32.totalorder %v1748_v15, %v1247_v48 }
0x1e8e   :  { %v1252_v7 = vsel %vm1250_vm1, %v1251_v50, 0 }
0x1e8f   :  { %v1253_v26 = vsel %vm943_vm2, %v1252_v7, 0 }
0x1e90   :  { %v1255_v3 = vshrl.u32 %v1253_v26, 16  ;;  %v1254_v51 = vand.u32 65535, %v1253_v26 }
0x1e92   :  { %v1257_v13 = vcvt.s32.f32 %v1255_v3  ;;  %v1256_v52 = vcvt.s32.f32 %v1254_v51 }
0x1e94   :  { %1260 = vadd.xlane.f32.xlu1 %v1257_v13 }
0x1e98   :  { %1258 = vadd.xlane.f32.xlu1 %v1256_v52 }
0x1f21   :  { %v1261_v53 = vpop.xlane.xlu1 %1260 }
0x1f22   :  { %v1263_v56 = vcvt.f32.s32 %v1261_v53 }
0x1f24   :  { %v1264_v59 = vshll.u32 %v1263_v56, 16 }
0x1f25   :  { %v1259_v57 = vpop.xlane.xlu1 %1258 }
0x1f26   :  { %v1262_v61 = vcvt.f32.s32 %v1259_v57 }
0x1f28   :  { %v1265_v62 = vadd.s32 %v1264_v59, %v1262_v61 }
0x1f2a   :  { %v1267_v63 = vsel %vm1266_vm4, %v1265_v62, %v1249_v49  ;;  %vm1268_vm5 = vcmp.eq.s32.totalorder %v1748_v15, %v1265_v62 }
0x1f2b   :  { %v1270_v14 = vsel %vm1268_vm5, %v1269_v0, 0 }
0x1f2c   :  { %v1271_v55 = vsel %vm943_vm2, %v1270_v14, 0 }
0x1f2d   :  { %v1273_v1 = vshrl.u32 %v1271_v55, 16  ;;  %v1272_v6 = vand.u32 65535, %v1271_v55 }
0x1f2f   :  { %v1275_v2 = vcvt.s32.f32 %v1273_v1  ;;  %v1274_v9 = vcvt.s32.f32 %v1272_v6 }
0x1f31   :  { %1278 = vadd.xlane.f32.xlu1 %v1275_v2 }
0x1f35   :  { %1276 = vadd.xlane.f32.xlu1 %v1274_v9 }
0x1fbe   :  { %v1279_v10 = vpop.xlane.xlu1 %1278 }
0x1fbf   :  { %v1281_v12 = vcvt.f32.s32 %v1279_v10 }
0x1fc1   :  { %v1282_v16 = vshll.u32 %v1281_v12, 16 }
0x1fc2   :  { %v1277_v54 = vpop.xlane.xlu1 %1276 }
0x1fc3   :  { %v1280_v17 = vcvt.f32.s32 %v1277_v54 }
0x1fc5   :  { %v1283_v27 = vadd.s32 %v1282_v16, %v1280_v17 }
0x1fc7   :  { %v1285_v18 = vsel %vm1284_vm6, %v1283_v27, %v1267_v63  ;;  %vm1286_vm3 = vcmp.eq.s32.totalorder %v1748_v15, %v1283_v27 }
0x1fc8   :  { %v1288_v20 = vsel %vm1286_vm3, %v1287_v19, 0 }
0x1fc9   :  { %v1289_v21 = vsel %vm943_vm2, %v1288_v20, 0 }
0x1fca   :  { %v1291_v22 = vshrl.u32 %v1289_v21, 16  ;;  %v1290_v23 = vand.u32 65535, %v1289_v21 }
0x1fcc   :  { %v1293_v25 = vcvt.s32.f32 %v1291_v22  ;;  %v1292_v24 = vcvt.s32.f32 %v1290_v23 }
0x1fce   :  { %1296 = vadd.xlane.f32.xlu1 %v1293_v25  ;;  %1294 = vadd.xlane.f32.xlu0 %v1292_v24 }
0x205b   :  { %v1297_v29 = vpop.xlane.xlu1 %1296  ;;  %v1295_v4 = vpop.xlane.xlu0 %1294 }
0x205c   :  { %v1299_v31 = vcvt.f32.s32 %v1297_v29  ;;  %v1298_v33 = vcvt.f32.s32 %v1295_v4 }
0x205e   :  { %v1300_v32 = vshll.u32 %v1299_v31, 16 }
0x2060   :  { %v1301_v34 = vadd.s32 %v1300_v32, %v1298_v33 }
0x2062   :  { %vm1304_vm8 = vcmp.eq.s32.totalorder %v1748_v15, %v1301_v34  ;;  %v1303_v37 = vsel %vm1302_vm7, %v1301_v34, %v1285_v18 }
0x2063   :  { %v1306_v38 = vsel %vm1304_vm8, %v1305_v35, 0 }
0x2064   :  { %v1307_v39 = vsel %vm943_vm2, %v1306_v38, 0 }
0x2065   :  { %v1309_v40 = vshrl.u32 %v1307_v39, 16  ;;  %v1308_v41 = vand.u32 65535, %v1307_v39 }
0x2067   :  { %v1311_v28 = vcvt.s32.f32 %v1309_v40  ;;  %v1310_v42 = vcvt.s32.f32 %v1308_v41 }
0x2069   :  { %1314 = vadd.xlane.f32.xlu1 %v1311_v28 }
0x206d   :  { %1312 = vadd.xlane.f32.xlu1 %v1310_v42 }
0x207e   :  { %1186 = vrot.lane.b32.xlu1 %v1988_v58, %s1662_s1 }
0x207f   :  { %1596 = shalt.err (!%p1593_p4)
}
0x2080   :  { %s1597_s25 = scalar_lea.hbm %s2061_s2, 128 }
0x2081   :  { %p1598_p5 = scmp.ne.s32.totalorder %s2061_s2, %s1597_s25  ;;  %p1601_p6 = scmp.lt.u32.totalorder %s1597_s25, %s2061_s2 }
0x2083   :  { %p1603_p7 = pnand %p1601_p6, %p1598_p5 }
0x2085   :  { %1606 = shalt.err (!%p1603_p7)
}
0x2086   :  { %1333 = dma.vmem_to_hbm [thread:$0]  %s1331_s21, 128, %s2061_s2, [#allocation5]   ;;  %vm1189_vm2 = vcmask 0   ;;  %vm1320_vm9 = vcmp.eq.s32.totalorder %v1748_v15, 0  ;;  %vm1322_vm10 = vcmask 57344  }
0x2087   :  { %s1664_s5 = smov [#allocation6]   ;;  %s1665_s7 = smov [#allocation8]  }
0x2088   :  { %s1340_s6 = sshll.u32 %s1664_s5, 4  ;;  %s1350_s8 = sshll.u32 %s1665_s7, 4  ;;  %s1341_s6 = int_to_ptr.vmem [resolvable:$true] %s1340_s6  ;;  %s2027_s8 = int_to_ptr.vmem [resolvable:$true] %s1350_s8 }
0x2089   :  { %s1607_s2 = scalar_lea.vmem %s1341_s6, 16  ;;  %s1611_s9 = scalar_lea.vmem %s1341_s6, 32 }
0x208a   :  { %p1608_p8 = scmp.ne.s32.totalorder %s1341_s6, %s1607_s2  ;;  %p1612_p9 = scmp.lt.s32.totalorder %s1341_s6, %s1341_s6 }
0x208b   :  { %p1613_p10 = scmp.lt.s32.totalorder %s1611_s9, %s1607_s2 }
0x208d   :  { %p1614_p11 = por %p1613_p10, %p1612_p9 }
0x208f   :  { %p1615_p12 = pnand %p1614_p11, %p1608_p8 }
0x20f6   :  { %v1315_v58 = vpop.xlane.xlu1 %1314 }
0x20f7   :  { %v1317_v8 = vcvt.f32.s32 %v1315_v58 }
0x20f9   :  { %v1318_v45 = vshll.u32 %v1317_v8, 16 }
0x20fa   :  { %v1313_v43 = vpop.xlane.xlu1 %1312 }
0x20fb   :  { %v1316_v36 = vcvt.f32.s32 %v1313_v43 }
0x20fd   :  { %v1319_v30 = vadd.s32 %v1318_v45, %v1316_v36 }
0x20fe   :  { %v1187_v44 = vpop.permute.xlu1 %1186 }
0x20ff   :  { %1190 = vst.msk [vmem:[#allocation8] sm:$0x1] %vm1189_vm2, %v1187_v44  ;;  %v1321_v46 = vsel %vm1320_vm9, %v1319_v30, %v1303_v37 }
0x2100   :  { %1323 = vst.msk [vmem:[#allocation6] sm:$0x1] %vm1322_vm10, %v1321_v46 }
0x2101   :  { %1618 = shalt.err (!%p1615_p12)
}
0x2102   :  { %s1619_s12 = scalar_lea.hbm %s2062_s3, 16 }
0x2103   :  { %p1620_p13 = scmp.ne.s32.totalorder %s2062_s3, %s1619_s12  ;;  %p1623_p0 = scmp.lt.u32.totalorder %s1619_s12, %s2062_s3 }
0x2105   :  { %p1625_p1 = pnand %p1623_p0, %p1620_p13 }
0x2107   :  { %1628 = shalt.err (!%p1625_p1)
}
0x2108   :  { %1343 = dma.vmem_to_hbm [thread:$0]  %s1341_s6, 16, %s2062_s3, [#allocation7]  }
0x2109   :  { %s1629_s19 = scalar_lea.vmem %s2027_s8, 16  ;;  %s1633_s1 = scalar_lea.vmem %s2027_s8, 32 }
0x210a   :  { %p1630_p2 = scmp.ne.s32.totalorder %s2027_s8, %s1629_s19  ;;  %p1634_p3 = scmp.lt.s32.totalorder %s2027_s8, %s2027_s8 }
0x210b   :  { %p1635_p4 = scmp.lt.s32.totalorder %s1633_s1, %s1629_s19 }
0x210d   :  { %p1636_p5 = por %p1635_p4, %p1634_p3 }
0x210f   :  { %p1637_p6 = pnand %p1636_p5, %p1630_p2 }
0x2111   :  { %1640 = shalt.err (!%p1637_p6)
}
0x2112   :  { %s1641_s22 = scalar_lea.hbm %s2063_s4, 16 }
0x2113   :  { %p1642_p7 = scmp.ne.s32.totalorder %s2063_s4, %s1641_s22  ;;  %p1645_p8 = scmp.lt.u32.totalorder %s1641_s22, %s2063_s4 }
0x2115   :  { %p1647_p9 = pnand %p1645_p8, %p1642_p7 }
0x2117   :  { %1650 = shalt.err (!%p1647_p9)
}
0x2118   :  { %1353 = dma.vmem_to_hbm [thread:$0]  %s2027_s8, 16, %s2063_s4, [#allocation7]  }
0x2119   :  { %1651 = dma.done.wait [#allocation5], 128  }
0x211a   :  { %1652 = vsyncadd [#allocation5], 4294967168 }
0x211b   :  { %1653 = dma.done.wait [#allocation7], 32  }
0x211c   :  { %1654 = vsyncadd [#allocation7], 4294967264 }
0x211d   :  { %1363 = vsyncpa [#allocation5], 1 }
0x211e   :  { %1364 = vsyncpa [#allocation7], 1 }

</bundles_post_ra>
